<compile_context>
chip_gen: v5e
topology: v5e:2x2
jax: 0.10.0
libtpu: 0.0.40
codegen_flags: <defaults>
</compile_context>

<pallas_src>
import jax
import jax.numpy as jnp
from jax import lax
from jax.experimental import pallas as pl
from jax.experimental.pallas import tpu as pltpu


# ----------------------------------------------------------------------------
# Kernel
# ----------------------------------------------------------------------------
def make_decoder_kernel(num_layers, seq_len, hidden):
    """Kernel factory: closes over static L (layers), T (steps), H (hidden)."""
    L, T, H = num_layers, seq_len, hidden

    def kernel(*refs):
        # inputs : embeds (T,B,E), state0 (2,L,B,H),
        #          [w_ih (in,4H), w_hh (H,4H), b (1,4H)] * L, fc_w (H,C), fc_b (1,C)
        # outputs: logits (B,C), state (2,L,B,H)
        emb_ref = refs[0]
        state0_ref = refs[1]
        layer_refs = refs[2:2 + 3 * L]
        fc_w_ref = refs[2 + 3 * L]
        fc_b_ref = refs[3 + 3 * L]
        logits_ref = refs[4 + 3 * L]
        state_ref = refs[5 + 3 * L]

        # Initial hidden / cell state pulled into registers once; carried
        # through the time loop (no per-step state_ref round trips).
        hs0 = tuple(state0_ref[0, l] for l in range(L))   # each (B, H)
        cs0 = tuple(state0_ref[1, l] for l in range(L))   # each (B, H)

        def step(t, carry):
            hs, cs = carry
            x = emb_ref[t]                                # (B, E) current step
            new_hs, new_cs = [], []
            for l in range(L):                            # static unroll over layers
                w_ih = layer_refs[3 * l + 0][...]         # (in_dim, 4H)
                w_hh = layer_refs[3 * l + 1][...]         # (H, 4H)
                b = layer_refs[3 * l + 2][...]            # (1, 4H)

                # Two full-lane-width MXU pushes per layer (4H = 128 cols).
                gates = (jnp.dot(x, w_ih, preferred_element_type=jnp.float32)
                         + jnp.dot(hs[l], w_hh,
                                   preferred_element_type=jnp.float32)
                         + b)                             # (B, 4H)

                # Activations on the full 128-lane vreg, then static slices.
                sg = jax.nn.sigmoid(gates)
                tg = jnp.tanh(gates)
                i_g = sg[:, 0 * H:1 * H]
                f_g = sg[:, 1 * H:2 * H]
                g_g = tg[:, 2 * H:3 * H]
                o_g = sg[:, 3 * H:4 * H]

                c_new = f_g * cs[l] + i_g * g_g
                h_new = o_g * jnp.tanh(c_new)
                new_hs.append(h_new)
                new_cs.append(c_new)
                x = h_new                                 # feeds next layer
                # (nn.LSTM built with default dropout=0 -> no inter-layer dropout.)
            return tuple(new_hs), tuple(new_cs)

        # T is small & static -> fully unrolled straight-line recurrence.
        hs, cs = lax.fori_loop(0, T, step, (hs0, cs0), unroll=True)

        # fc(output[:, -1, :]) and final state: written exactly once.
        logits_ref[...] = (
            jnp.dot(hs[-1], fc_w_ref[...], preferred_element_type=jnp.float32)
            + fc_b_ref[...])
        for l in range(L):
            state_ref[0, l] = hs[l]
            state_ref[1, l] = cs[l]

    return kernel


# ----------------------------------------------------------------------------
# Wrapper
# ----------------------------------------------------------------------------
def _resident_spec(shape):
    """Full-array block, constant index_map -> DMA'd once, VMEM-resident."""
    n = len(shape)
    return pl.BlockSpec(tuple(shape), lambda i, _n=n: (0,) * _n)


@jax.jit
def decoder_forward(embeds_bte, h0, c0, params):
    """Fused DecoderRNN forward (eval mode).

    embeds_bte : (B, T, E) float32   — word_embedding(sentence)
    h0, c0     : (L, B, H) float32   — LSTM initial hidden / cell
    returns (logits (B, C), h_n (L, B, H), c_n (L, B, H))
    """
    B, T, E = embeds_bte.shape
    L, _, H = h0.shape
    C = params['fc_b'].shape[-1]

    kernel_args = []
    in_specs = []

    # Whole embedding sequence resident in VMEM (one DMA, time-major layout).
    embeds_tbe = jnp.transpose(embeds_bte, (1, 0, 2))          # (T, B, E)
    kernel_args.append(embeds_tbe)
    in_specs.append(_resident_spec(embeds_tbe.shape))

    # Initial state packed as one (2, L, B, H) slab (aliased to the output).
    state0 = jnp.stack([h0, c0])                               # (2, L, B, H)
    kernel_args.append(state0)
    in_specs.append(_resident_spec(state0.shape))

    # Static weight re-layout (compile-time): fused per-layer gate matrices
    # (in_dim, 4H) / (H, 4H) / (1, 4H) so each layer is 2 full-width matmuls.
    for l in range(L):
        lay = params['lstm'][l]
        w_ih = lay['w_ih'].T                                   # (in_dim, 4H)
        w_hh = lay['w_hh'].T                                   # (H, 4H)
        b = (lay['b_ih'] + lay['b_hh']).reshape(1, 4 * H)      # (1, 4H)
        for a in (w_ih, w_hh, b):
            kernel_args.append(a)
            in_specs.append(_resident_spec(a.shape))

    fc_w = params['fc_w'].T                                    # (H, C)
    fc_b = params['fc_b'].reshape(1, C)                        # (1, C)
    for a in (fc_w, fc_b):
        kernel_args.append(a)
        in_specs.append(_resident_spec(a.shape))

    out_shapes = (
        jax.ShapeDtypeStruct((B, C), jnp.float32),             # logits
        jax.ShapeDtypeStruct((2, L, B, H), jnp.float32),       # (h_n, c_n)
    )
    out_specs = (_resident_spec((B, C)), _resident_spec((2, L, B, H)))

    logits, state = pl.pallas_call(
        make_decoder_kernel(L, T, H),
        out_shape=out_shapes,
        grid_spec=pltpu.PrefetchScalarGridSpec(
            num_scalar_prefetch=0,
            grid=(1,),                 # single launch: recurrence lives in-kernel
            in_specs=in_specs,
            out_specs=out_specs,
        ),
        input_output_aliases={1: 1},   # state0 buffer donated to (h_n, c_n)
        compiler_params=pltpu.CompilerParams(
            dimension_semantics=("arbitrary",)),
    )(*kernel_args)

    return logits, state[0], state[1]


# ----------------------------------------------------------------------------
# Plain-JAX glue + reference
# ----------------------------------------------------------------------------
def init_hidden_glue(encoder_h, init_w, init_b, num_layers, batch, hidden):
    """Mirror of DecoderRNN.initHidden: Linear(2L -> L) over the layer axis."""
    x = jnp.transpose(encoder_h, (2, 1, 0))                    # (H, B, 2L)
    y = jnp.einsum('hbk,lk->hbl', x, init_w) + init_b          # (H, B, L)
    h0 = jnp.transpose(y, (2, 1, 0))                           # (L, B, H)
    c0 = jnp.zeros((num_layers, batch, hidden), jnp.float32)
    return h0, c0


def reference_forward(embeds_bte, h0, c0, params):
    """Pure-JAX mirror of the PyTorch forward (train=False)."""
    B, T, _ = embeds_bte.shape
    L, _, H = h0.shape
    h = [h0[l] for l in range(L)]
    c = [c0[l] for l in range(L)]
    x = None
    for t in range(T):
        x = embeds_bte[:, t, :]
        for l in range(L):
            lay = params['lstm'][l]
            gates = (x @ lay['w_ih'].T + h[l] @ lay['w_hh'].T
                     + lay['b_ih'] + lay['b_hh'])
            i_g = jax.nn.sigmoid(gates[:, 0 * H:1 * H])
            f_g = jax.nn.sigmoid(gates[:, 1 * H:2 * H])
            g_g = jnp.tanh(gates[:, 2 * H:3 * H])
            o_g = jax.nn.sigmoid(gates[:, 3 * H:4 * H])
            c[l] = f_g * c[l] + i_g * g_g
            h[l] = o_g * jnp.tanh(c[l])
            x = h[l]
    logits = x @ params['fc_w'].T + params['fc_b']
    return logits, jnp.stack(h), jnp.stack(c)


# ----------------------------------------------------------------------------
# Example / test
# ----------------------------------------------------------------------------
if __name__ == "__main__":
    vocab_size = 50
    embedding_size = 64       # E
    hidden_size = 32          # H
    num_layers = 2            # L
    num_classes = 8           # C
    dropout_rate = 0.1        # unused in eval path
    B, T = 2, 8               # batch, decoder sequence length

    key = jax.random.PRNGKey(0)
    keys = iter(jax.random.split(key, 32))
    scale = 0.1

    def nrm(shape):
        return scale * jax.random.normal(next(keys), shape, jnp.float32)

    # Parameters in PyTorch layout (shapes follow the nn.Module __init__).
    lstm_params = []
    for l in range(num_layers):
        in_dim = embedding_size if l == 0 else hidden_size
        lstm_params.append({
            'w_ih': nrm((4 * hidden_size, in_dim)),
            'w_hh': nrm((4 * hidden_size, hidden_size)),
            'b_ih': nrm((4 * hidden_size,)),
            'b_hh': nrm((4 * hidden_size,)),
        })
    params = {
        'embedding': nrm((vocab_size, embedding_size)),
        'init_w': nrm((num_layers, 2 * num_layers)),
        'init_b': nrm((num_layers,)),
        'lstm': lstm_params,
        'fc_w': nrm((num_classes, hidden_size)),
        'fc_b': nrm((num_classes,)),
    }

    # Inputs.
    sentence = jax.random.randint(next(keys), (B, T), 0, vocab_size)
    encoder_h = nrm((2 * num_layers, B, hidden_size))   # init_hidden[0]

    # Glue (outside the kernel): embedding gather + initHidden linear.
    embeds = params['embedding'][sentence]               # (B, T, E)
    h0, c0 = init_hidden_glue(encoder_h, params['init_w'], params['init_b'],
                              num_layers, B, hidden_size)

    logits, h_n, c_n = decoder_forward(embeds, h0, c0, params)
    jax.block_until_ready((logits, h_n, c_n))

    ref_logits, ref_h, ref_c = reference_forward(embeds, h0, c0, params)
    assert jnp.allclose(logits, ref_logits, atol=1e-4, rtol=1e-4)
    assert jnp.allclose(h_n, ref_h, atol=1e-4, rtol=1e-4)
    assert jnp.allclose(c_n, ref_c, atol=1e-4, rtol=1e-4)

    print("KERNEL_OK")
</pallas_src>

<mosaic_0001>
module attributes {stable_mosaic.version = 11 : i64} {
  func.func @kernel(%arg0: i32, %arg1: memref<8x2x64xf32, #tpu.memory_space<vmem>>, %arg2: memref<2x2x2x32xf32, #tpu.memory_space<vmem>>, %arg3: memref<64x128xf32, #tpu.memory_space<vmem>>, %arg4: memref<32x128xf32, #tpu.memory_space<vmem>>, %arg5: memref<1x128xf32, #tpu.memory_space<vmem>>, %arg6: memref<32x128xf32, #tpu.memory_space<vmem>>, %arg7: memref<32x128xf32, #tpu.memory_space<vmem>>, %arg8: memref<1x128xf32, #tpu.memory_space<vmem>>, %arg9: memref<32x8xf32, #tpu.memory_space<vmem>>, %arg10: memref<1x8xf32, #tpu.memory_space<vmem>>, %arg11: memref<2x8xf32, #tpu.memory_space<vmem>>, %arg12: memref<2x2x2x32xf32, #tpu.memory_space<vmem>>) attributes {dimension_semantics = [#tpu.dimension_semantics<arbitrary>], iteration_bounds = array<i64: 1>, scalar_prefetch = 0 : i64, scratch_operands = 0 : i64, tpu.core_type = #tpu.core_type<tc>, window_params = [{pipeline_mode = #tpu.pipeline_mode<synchronous>, transform_indices = @transform_0, window_bounds = array<i64: 8, 2, 64>}, {pipeline_mode = #tpu.pipeline_mode<synchronous>, transform_indices = @transform_1, window_bounds = array<i64: 2, 2, 2, 32>}, {pipeline_mode = #tpu.pipeline_mode<synchronous>, transform_indices = @transform_2, window_bounds = array<i64: 64, 128>}, {pipeline_mode = #tpu.pipeline_mode<synchronous>, transform_indices = @transform_3, window_bounds = array<i64: 32, 128>}, {pipeline_mode = #tpu.pipeline_mode<synchronous>, transform_indices = @transform_4, window_bounds = array<i64: 1, 128>}, {pipeline_mode = #tpu.pipeline_mode<synchronous>, transform_indices = @transform_5, window_bounds = array<i64: 32, 128>}, {pipeline_mode = #tpu.pipeline_mode<synchronous>, transform_indices = @transform_6, window_bounds = array<i64: 32, 128>}, {pipeline_mode = #tpu.pipeline_mode<synchronous>, transform_indices = @transform_7, window_bounds = array<i64: 1, 128>}, {pipeline_mode = #tpu.pipeline_mode<synchronous>, transform_indices = @transform_8, window_bounds = array<i64: 32, 8>}, {pipeline_mode = #tpu.pipeline_mode<synchronous>, transform_indices = @transform_9, window_bounds = array<i64: 1, 8>}, {pipeline_mode = #tpu.pipeline_mode<synchronous>, transform_indices = @transform_10, window_bounds = array<i64: 2, 8>}, {pipeline_mode = #tpu.pipeline_mode<synchronous>, transform_indices = @transform_11, window_bounds = array<i64: 2, 2, 2, 32>}]} {
    %c0 = arith.constant 0 : index
    %c0_0 = arith.constant 0 : index
    %c0_1 = arith.constant 0 : index
    %c0_2 = arith.constant 0 : index
    %0 = vector.load %arg2[%c0, %c0_0, %c0_1, %c0_2] : memref<2x2x2x32xf32, #tpu.memory_space<vmem>>, vector<1x1x2x32xf32>
    %1 = vector.shape_cast %0 : vector<1x1x2x32xf32> to vector<2x32xf32>
    %c0_3 = arith.constant 0 : index
    %c1 = arith.constant 1 : index
    %c0_4 = arith.constant 0 : index
    %c0_5 = arith.constant 0 : index
    %2 = vector.load %arg2[%c0_3, %c1, %c0_4, %c0_5] : memref<2x2x2x32xf32, #tpu.memory_space<vmem>>, vector<1x1x2x32xf32>
    %3 = vector.shape_cast %2 : vector<1x1x2x32xf32> to vector<2x32xf32>
    %c1_6 = arith.constant 1 : index
    %c0_7 = arith.constant 0 : index
    %c0_8 = arith.constant 0 : index
    %c0_9 = arith.constant 0 : index
    %4 = vector.load %arg2[%c1_6, %c0_7, %c0_8, %c0_9] : memref<2x2x2x32xf32, #tpu.memory_space<vmem>>, vector<1x1x2x32xf32>
    %5 = vector.shape_cast %4 : vector<1x1x2x32xf32> to vector<2x32xf32>
    %c1_10 = arith.constant 1 : index
    %c1_11 = arith.constant 1 : index
    %c0_12 = arith.constant 0 : index
    %c0_13 = arith.constant 0 : index
    %6 = vector.load %arg2[%c1_10, %c1_11, %c0_12, %c0_13] : memref<2x2x2x32xf32, #tpu.memory_space<vmem>>, vector<1x1x2x32xf32>
    %7 = vector.shape_cast %6 : vector<1x1x2x32xf32> to vector<2x32xf32>
    %c0_i32 = arith.constant 0 : i32
    %8 = arith.index_cast %c0_i32 : i32 to index
    %c0_14 = arith.constant 0 : index
    %c0_15 = arith.constant 0 : index
    %9 = vector.load %arg1[%8, %c0_14, %c0_15] : memref<8x2x64xf32, #tpu.memory_space<vmem>>, vector<1x2x64xf32>
    %10 = vector.shape_cast %9 : vector<1x2x64xf32> to vector<2x64xf32>
    %c0_16 = arith.constant 0 : index
    %c0_17 = arith.constant 0 : index
    %11 = vector.load %arg3[%c0_16, %c0_17] : memref<64x128xf32, #tpu.memory_space<vmem>>, vector<64x128xf32>
    %c0_18 = arith.constant 0 : index
    %c0_19 = arith.constant 0 : index
    %12 = vector.load %arg4[%c0_18, %c0_19] : memref<32x128xf32, #tpu.memory_space<vmem>>, vector<32x128xf32>
    %c0_20 = arith.constant 0 : index
    %c0_21 = arith.constant 0 : index
    %13 = vector.load %arg5[%c0_20, %c0_21] : memref<1x128xf32, #tpu.memory_space<vmem>>, vector<1x128xf32>
    %cst = arith.constant dense<0.000000e+00> : vector<2x128xf32>
    %14 = tpu.matmul %10, %11, %cst {dimension_numbers = #tpu.dot_dimension_numbers<[1], [0], [0], [1], [0, 0, 1, 1], [], []>} : vector<2x64xf32>, vector<64x128xf32>, vector<2x128xf32> -> vector<2x128xf32>
    %cst_22 = arith.constant dense<0.000000e+00> : vector<2x128xf32>
    %15 = tpu.matmul %1, %12, %cst_22 {dimension_numbers = #tpu.dot_dimension_numbers<[1], [0], [0], [1], [0, 0, 1, 1], [], []>} : vector<2x32xf32>, vector<32x128xf32>, vector<2x128xf32> -> vector<2x128xf32>
    %16 = arith.addf %14, %15 : vector<2x128xf32>
    %17 = vector.broadcast %13 : vector<1x128xf32> to vector<2x128xf32>
    %18 = arith.addf %16, %17 : vector<2x128xf32>
    %19 = arith.negf %18 : vector<2x128xf32>
    %20 = math.exp %19 : vector<2x128xf32>
    %cst_23 = arith.constant 1.000000e+00 : f32
    %21 = vector.broadcast %cst_23 : f32 to vector<2x128xf32>
    %22 = arith.addf %21, %20 : vector<2x128xf32>
    %23 = arith.divf %21, %22 : vector<2x128xf32>
    %24 = math.tanh %18 : vector<2x128xf32>
    %25 = vector.extract_strided_slice %23 {offsets = [0, 0], sizes = [2, 32], strides = [1, 1]} : vector<2x128xf32> to vector<2x32xf32>
    %26 = vector.extract_strided_slice %23 {offsets = [0, 32], sizes = [2, 32], strides = [1, 1]} : vector<2x128xf32> to vector<2x32xf32>
    %27 = vector.extract_strided_slice %24 {offsets = [0, 64], sizes = [2, 32], strides = [1, 1]} : vector<2x128xf32> to vector<2x32xf32>
    %28 = vector.extract_strided_slice %23 {offsets = [0, 96], sizes = [2, 32], strides = [1, 1]} : vector<2x128xf32> to vector<2x32xf32>
    %29 = arith.mulf %26, %5 : vector<2x32xf32>
    %30 = arith.mulf %25, %27 : vector<2x32xf32>
    %31 = arith.addf %29, %30 : vector<2x32xf32>
    %32 = math.tanh %31 : vector<2x32xf32>
    %33 = arith.mulf %28, %32 : vector<2x32xf32>
    %c0_24 = arith.constant 0 : index
    %c0_25 = arith.constant 0 : index
    %34 = vector.load %arg6[%c0_24, %c0_25] : memref<32x128xf32, #tpu.memory_space<vmem>>, vector<32x128xf32>
    %c0_26 = arith.constant 0 : index
    %c0_27 = arith.constant 0 : index
    %35 = vector.load %arg7[%c0_26, %c0_27] : memref<32x128xf32, #tpu.memory_space<vmem>>, vector<32x128xf32>
    %c0_28 = arith.constant 0 : index
    %c0_29 = arith.constant 0 : index
    %36 = vector.load %arg8[%c0_28, %c0_29] : memref<1x128xf32, #tpu.memory_space<vmem>>, vector<1x128xf32>
    %cst_30 = arith.constant dense<0.000000e+00> : vector<2x128xf32>
    %37 = tpu.matmul %33, %34, %cst_30 {dimension_numbers = #tpu.dot_dimension_numbers<[1], [0], [0], [1], [0, 0, 1, 1], [], []>} : vector<2x32xf32>, vector<32x128xf32>, vector<2x128xf32> -> vector<2x128xf32>
    %cst_31 = arith.constant dense<0.000000e+00> : vector<2x128xf32>
    %38 = tpu.matmul %3, %35, %cst_31 {dimension_numbers = #tpu.dot_dimension_numbers<[1], [0], [0], [1], [0, 0, 1, 1], [], []>} : vector<2x32xf32>, vector<32x128xf32>, vector<2x128xf32> -> vector<2x128xf32>
    %39 = arith.addf %37, %38 : vector<2x128xf32>
    %40 = vector.broadcast %36 : vector<1x128xf32> to vector<2x128xf32>
    %41 = arith.addf %39, %40 : vector<2x128xf32>
    %42 = arith.negf %41 : vector<2x128xf32>
    %43 = math.exp %42 : vector<2x128xf32>
    %cst_32 = arith.constant 1.000000e+00 : f32
    %44 = vector.broadcast %cst_32 : f32 to vector<2x128xf32>
    %45 = arith.addf %44, %43 : vector<2x128xf32>
    %46 = arith.divf %44, %45 : vector<2x128xf32>
    %47 = math.tanh %41 : vector<2x128xf32>
    %48 = vector.extract_strided_slice %46 {offsets = [0, 0], sizes = [2, 32], strides = [1, 1]} : vector<2x128xf32> to vector<2x32xf32>
    %49 = vector.extract_strided_slice %46 {offsets = [0, 32], sizes = [2, 32], strides = [1, 1]} : vector<2x128xf32> to vector<2x32xf32>
    %50 = vector.extract_strided_slice %47 {offsets = [0, 64], sizes = [2, 32], strides = [1, 1]} : vector<2x128xf32> to vector<2x32xf32>
    %51 = vector.extract_strided_slice %46 {offsets = [0, 96], sizes = [2, 32], strides = [1, 1]} : vector<2x128xf32> to vector<2x32xf32>
    %52 = arith.mulf %49, %7 : vector<2x32xf32>
    %53 = arith.mulf %48, %50 : vector<2x32xf32>
    %54 = arith.addf %52, %53 : vector<2x32xf32>
    %55 = math.tanh %54 : vector<2x32xf32>
    %56 = arith.mulf %51, %55 : vector<2x32xf32>
    %c1_i32 = arith.constant 1 : i32
    %57 = arith.index_cast %c1_i32 : i32 to index
    %c0_33 = arith.constant 0 : index
    %c0_34 = arith.constant 0 : index
    %58 = vector.load %arg1[%57, %c0_33, %c0_34] : memref<8x2x64xf32, #tpu.memory_space<vmem>>, vector<1x2x64xf32>
    %59 = vector.shape_cast %58 : vector<1x2x64xf32> to vector<2x64xf32>
    %c0_35 = arith.constant 0 : index
    %c0_36 = arith.constant 0 : index
    %60 = vector.load %arg3[%c0_35, %c0_36] : memref<64x128xf32, #tpu.memory_space<vmem>>, vector<64x128xf32>
    %c0_37 = arith.constant 0 : index
    %c0_38 = arith.constant 0 : index
    %61 = vector.load %arg4[%c0_37, %c0_38] : memref<32x128xf32, #tpu.memory_space<vmem>>, vector<32x128xf32>
    %c0_39 = arith.constant 0 : index
    %c0_40 = arith.constant 0 : index
    %62 = vector.load %arg5[%c0_39, %c0_40] : memref<1x128xf32, #tpu.memory_space<vmem>>, vector<1x128xf32>
    %cst_41 = arith.constant dense<0.000000e+00> : vector<2x128xf32>
    %63 = tpu.matmul %59, %60, %cst_41 {dimension_numbers = #tpu.dot_dimension_numbers<[1], [0], [0], [1], [0, 0, 1, 1], [], []>} : vector<2x64xf32>, vector<64x128xf32>, vector<2x128xf32> -> vector<2x128xf32>
    %cst_42 = arith.constant dense<0.000000e+00> : vector<2x128xf32>
    %64 = tpu.matmul %33, %61, %cst_42 {dimension_numbers = #tpu.dot_dimension_numbers<[1], [0], [0], [1], [0, 0, 1, 1], [], []>} : vector<2x32xf32>, vector<32x128xf32>, vector<2x128xf32> -> vector<2x128xf32>
    %65 = arith.addf %63, %64 : vector<2x128xf32>
    %66 = vector.broadcast %62 : vector<1x128xf32> to vector<2x128xf32>
    %67 = arith.addf %65, %66 : vector<2x128xf32>
    %68 = arith.negf %67 : vector<2x128xf32>
    %69 = math.exp %68 : vector<2x128xf32>
    %cst_43 = arith.constant 1.000000e+00 : f32
    %70 = vector.broadcast %cst_43 : f32 to vector<2x128xf32>
    %71 = arith.addf %70, %69 : vector<2x128xf32>
    %72 = arith.divf %70, %71 : vector<2x128xf32>
    %73 = math.tanh %67 : vector<2x128xf32>
    %74 = vector.extract_strided_slice %72 {offsets = [0, 0], sizes = [2, 32], strides = [1, 1]} : vector<2x128xf32> to vector<2x32xf32>
    %75 = vector.extract_strided_slice %72 {offsets = [0, 32], sizes = [2, 32], strides = [1, 1]} : vector<2x128xf32> to vector<2x32xf32>
    %76 = vector.extract_strided_slice %73 {offsets = [0, 64], sizes = [2, 32], strides = [1, 1]} : vector<2x128xf32> to vector<2x32xf32>
    %77 = vector.extract_strided_slice %72 {offsets = [0, 96], sizes = [2, 32], strides = [1, 1]} : vector<2x128xf32> to vector<2x32xf32>
    %78 = arith.mulf %75, %31 : vector<2x32xf32>
    %79 = arith.mulf %74, %76 : vector<2x32xf32>
    %80 = arith.addf %78, %79 : vector<2x32xf32>
    %81 = math.tanh %80 : vector<2x32xf32>
    %82 = arith.mulf %77, %81 : vector<2x32xf32>
    %c0_44 = arith.constant 0 : index
    %c0_45 = arith.constant 0 : index
    %83 = vector.load %arg6[%c0_44, %c0_45] : memref<32x128xf32, #tpu.memory_space<vmem>>, vector<32x128xf32>
    %c0_46 = arith.constant 0 : index
    %c0_47 = arith.constant 0 : index
    %84 = vector.load %arg7[%c0_46, %c0_47] : memref<32x128xf32, #tpu.memory_space<vmem>>, vector<32x128xf32>
    %c0_48 = arith.constant 0 : index
    %c0_49 = arith.constant 0 : index
    %85 = vector.load %arg8[%c0_48, %c0_49] : memref<1x128xf32, #tpu.memory_space<vmem>>, vector<1x128xf32>
    %cst_50 = arith.constant dense<0.000000e+00> : vector<2x128xf32>
    %86 = tpu.matmul %82, %83, %cst_50 {dimension_numbers = #tpu.dot_dimension_numbers<[1], [0], [0], [1], [0, 0, 1, 1], [], []>} : vector<2x32xf32>, vector<32x128xf32>, vector<2x128xf32> -> vector<2x128xf32>
    %cst_51 = arith.constant dense<0.000000e+00> : vector<2x128xf32>
    %87 = tpu.matmul %56, %84, %cst_51 {dimension_numbers = #tpu.dot_dimension_numbers<[1], [0], [0], [1], [0, 0, 1, 1], [], []>} : vector<2x32xf32>, vector<32x128xf32>, vector<2x128xf32> -> vector<2x128xf32>
    %88 = arith.addf %86, %87 : vector<2x128xf32>
    %89 = vector.broadcast %85 : vector<1x128xf32> to vector<2x128xf32>
    %90 = arith.addf %88, %89 : vector<2x128xf32>
    %91 = arith.negf %90 : vector<2x128xf32>
    %92 = math.exp %91 : vector<2x128xf32>
    %cst_52 = arith.constant 1.000000e+00 : f32
    %93 = vector.broadcast %cst_52 : f32 to vector<2x128xf32>
    %94 = arith.addf %93, %92 : vector<2x128xf32>
    %95 = arith.divf %93, %94 : vector<2x128xf32>
    %96 = math.tanh %90 : vector<2x128xf32>
    %97 = vector.extract_strided_slice %95 {offsets = [0, 0], sizes = [2, 32], strides = [1, 1]} : vector<2x128xf32> to vector<2x32xf32>
    %98 = vector.extract_strided_slice %95 {offsets = [0, 32], sizes = [2, 32], strides = [1, 1]} : vector<2x128xf32> to vector<2x32xf32>
    %99 = vector.extract_strided_slice %96 {offsets = [0, 64], sizes = [2, 32], strides = [1, 1]} : vector<2x128xf32> to vector<2x32xf32>
    %100 = vector.extract_strided_slice %95 {offsets = [0, 96], sizes = [2, 32], strides = [1, 1]} : vector<2x128xf32> to vector<2x32xf32>
    %101 = arith.mulf %98, %54 : vector<2x32xf32>
    %102 = arith.mulf %97, %99 : vector<2x32xf32>
    %103 = arith.addf %101, %102 : vector<2x32xf32>
    %104 = math.tanh %103 : vector<2x32xf32>
    %105 = arith.mulf %100, %104 : vector<2x32xf32>
    %c2_i32 = arith.constant 2 : i32
    %106 = arith.index_cast %c2_i32 : i32 to index
    %c0_53 = arith.constant 0 : index
    %c0_54 = arith.constant 0 : index
    %107 = vector.load %arg1[%106, %c0_53, %c0_54] : memref<8x2x64xf32, #tpu.memory_space<vmem>>, vector<1x2x64xf32>
    %108 = vector.shape_cast %107 : vector<1x2x64xf32> to vector<2x64xf32>
    %c0_55 = arith.constant 0 : index
    %c0_56 = arith.constant 0 : index
    %109 = vector.load %arg3[%c0_55, %c0_56] : memref<64x128xf32, #tpu.memory_space<vmem>>, vector<64x128xf32>
    %c0_57 = arith.constant 0 : index
    %c0_58 = arith.constant 0 : index
    %110 = vector.load %arg4[%c0_57, %c0_58] : memref<32x128xf32, #tpu.memory_space<vmem>>, vector<32x128xf32>
    %c0_59 = arith.constant 0 : index
    %c0_60 = arith.constant 0 : index
    %111 = vector.load %arg5[%c0_59, %c0_60] : memref<1x128xf32, #tpu.memory_space<vmem>>, vector<1x128xf32>
    %cst_61 = arith.constant dense<0.000000e+00> : vector<2x128xf32>
    %112 = tpu.matmul %108, %109, %cst_61 {dimension_numbers = #tpu.dot_dimension_numbers<[1], [0], [0], [1], [0, 0, 1, 1], [], []>} : vector<2x64xf32>, vector<64x128xf32>, vector<2x128xf32> -> vector<2x128xf32>
    %cst_62 = arith.constant dense<0.000000e+00> : vector<2x128xf32>
    %113 = tpu.matmul %82, %110, %cst_62 {dimension_numbers = #tpu.dot_dimension_numbers<[1], [0], [0], [1], [0, 0, 1, 1], [], []>} : vector<2x32xf32>, vector<32x128xf32>, vector<2x128xf32> -> vector<2x128xf32>
    %114 = arith.addf %112, %113 : vector<2x128xf32>
    %115 = vector.broadcast %111 : vector<1x128xf32> to vector<2x128xf32>
    %116 = arith.addf %114, %115 : vector<2x128xf32>
    %117 = arith.negf %116 : vector<2x128xf32>
    %118 = math.exp %117 : vector<2x128xf32>
    %cst_63 = arith.constant 1.000000e+00 : f32
    %119 = vector.broadcast %cst_63 : f32 to vector<2x128xf32>
    %120 = arith.addf %119, %118 : vector<2x128xf32>
    %121 = arith.divf %119, %120 : vector<2x128xf32>
    %122 = math.tanh %116 : vector<2x128xf32>
    %123 = vector.extract_strided_slice %121 {offsets = [0, 0], sizes = [2, 32], strides = [1, 1]} : vector<2x128xf32> to vector<2x32xf32>
    %124 = vector.extract_strided_slice %121 {offsets = [0, 32], sizes = [2, 32], strides = [1, 1]} : vector<2x128xf32> to vector<2x32xf32>
    %125 = vector.extract_strided_slice %122 {offsets = [0, 64], sizes = [2, 32], strides = [1, 1]} : vector<2x128xf32> to vector<2x32xf32>
    %126 = vector.extract_strided_slice %121 {offsets = [0, 96], sizes = [2, 32], strides = [1, 1]} : vector<2x128xf32> to vector<2x32xf32>
    %127 = arith.mulf %124, %80 : vector<2x32xf32>
    %128 = arith.mulf %123, %125 : vector<2x32xf32>
    %129 = arith.addf %127, %128 : vector<2x32xf32>
    %130 = math.tanh %129 : vector<2x32xf32>
    %131 = arith.mulf %126, %130 : vector<2x32xf32>
    %c0_64 = arith.constant 0 : index
    %c0_65 = arith.constant 0 : index
    %132 = vector.load %arg6[%c0_64, %c0_65] : memref<32x128xf32, #tpu.memory_space<vmem>>, vector<32x128xf32>
    %c0_66 = arith.constant 0 : index
    %c0_67 = arith.constant 0 : index
    %133 = vector.load %arg7[%c0_66, %c0_67] : memref<32x128xf32, #tpu.memory_space<vmem>>, vector<32x128xf32>
    %c0_68 = arith.constant 0 : index
    %c0_69 = arith.constant 0 : index
    %134 = vector.load %arg8[%c0_68, %c0_69] : memref<1x128xf32, #tpu.memory_space<vmem>>, vector<1x128xf32>
    %cst_70 = arith.constant dense<0.000000e+00> : vector<2x128xf32>
    %135 = tpu.matmul %131, %132, %cst_70 {dimension_numbers = #tpu.dot_dimension_numbers<[1], [0], [0], [1], [0, 0, 1, 1], [], []>} : vector<2x32xf32>, vector<32x128xf32>, vector<2x128xf32> -> vector<2x128xf32>
    %cst_71 = arith.constant dense<0.000000e+00> : vector<2x128xf32>
    %136 = tpu.matmul %105, %133, %cst_71 {dimension_numbers = #tpu.dot_dimension_numbers<[1], [0], [0], [1], [0, 0, 1, 1], [], []>} : vector<2x32xf32>, vector<32x128xf32>, vector<2x128xf32> -> vector<2x128xf32>
    %137 = arith.addf %135, %136 : vector<2x128xf32>
    %138 = vector.broadcast %134 : vector<1x128xf32> to vector<2x128xf32>
    %139 = arith.addf %137, %138 : vector<2x128xf32>
    %140 = arith.negf %139 : vector<2x128xf32>
    %141 = math.exp %140 : vector<2x128xf32>
    %cst_72 = arith.constant 1.000000e+00 : f32
    %142 = vector.broadcast %cst_72 : f32 to vector<2x128xf32>
    %143 = arith.addf %142, %141 : vector<2x128xf32>
    %144 = arith.divf %142, %143 : vector<2x128xf32>
    %145 = math.tanh %139 : vector<2x128xf32>
    %146 = vector.extract_strided_slice %144 {offsets = [0, 0], sizes = [2, 32], strides = [1, 1]} : vector<2x128xf32> to vector<2x32xf32>
    %147 = vector.extract_strided_slice %144 {offsets = [0, 32], sizes = [2, 32], strides = [1, 1]} : vector<2x128xf32> to vector<2x32xf32>
    %148 = vector.extract_strided_slice %145 {offsets = [0, 64], sizes = [2, 32], strides = [1, 1]} : vector<2x128xf32> to vector<2x32xf32>
    %149 = vector.extract_strided_slice %144 {offsets = [0, 96], sizes = [2, 32], strides = [1, 1]} : vector<2x128xf32> to vector<2x32xf32>
    %150 = arith.mulf %147, %103 : vector<2x32xf32>
    %151 = arith.mulf %146, %148 : vector<2x32xf32>
    %152 = arith.addf %150, %151 : vector<2x32xf32>
    %153 = math.tanh %152 : vector<2x32xf32>
    %154 = arith.mulf %149, %153 : vector<2x32xf32>
    %c3_i32 = arith.constant 3 : i32
    %155 = arith.index_cast %c3_i32 : i32 to index
    %c0_73 = arith.constant 0 : index
    %c0_74 = arith.constant 0 : index
    %156 = vector.load %arg1[%155, %c0_73, %c0_74] : memref<8x2x64xf32, #tpu.memory_space<vmem>>, vector<1x2x64xf32>
    %157 = vector.shape_cast %156 : vector<1x2x64xf32> to vector<2x64xf32>
    %c0_75 = arith.constant 0 : index
    %c0_76 = arith.constant 0 : index
    %158 = vector.load %arg3[%c0_75, %c0_76] : memref<64x128xf32, #tpu.memory_space<vmem>>, vector<64x128xf32>
    %c0_77 = arith.constant 0 : index
    %c0_78 = arith.constant 0 : index
    %159 = vector.load %arg4[%c0_77, %c0_78] : memref<32x128xf32, #tpu.memory_space<vmem>>, vector<32x128xf32>
    %c0_79 = arith.constant 0 : index
    %c0_80 = arith.constant 0 : index
    %160 = vector.load %arg5[%c0_79, %c0_80] : memref<1x128xf32, #tpu.memory_space<vmem>>, vector<1x128xf32>
    %cst_81 = arith.constant dense<0.000000e+00> : vector<2x128xf32>
    %161 = tpu.matmul %157, %158, %cst_81 {dimension_numbers = #tpu.dot_dimension_numbers<[1], [0], [0], [1], [0, 0, 1, 1], [], []>} : vector<2x64xf32>, vector<64x128xf32>, vector<2x128xf32> -> vector<2x128xf32>
    %cst_82 = arith.constant dense<0.000000e+00> : vector<2x128xf32>
    %162 = tpu.matmul %131, %159, %cst_82 {dimension_numbers = #tpu.dot_dimension_numbers<[1], [0], [0], [1], [0, 0, 1, 1], [], []>} : vector<2x32xf32>, vector<32x128xf32>, vector<2x128xf32> -> vector<2x128xf32>
    %163 = arith.addf %161, %162 : vector<2x128xf32>
    %164 = vector.broadcast %160 : vector<1x128xf32> to vector<2x128xf32>
    %165 = arith.addf %163, %164 : vector<2x128xf32>
    %166 = arith.negf %165 : vector<2x128xf32>
    %167 = math.exp %166 : vector<2x128xf32>
    %cst_83 = arith.constant 1.000000e+00 : f32
    %168 = vector.broadcast %cst_83 : f32 to vector<2x128xf32>
    %169 = arith.addf %168, %167 : vector<2x128xf32>
    %170 = arith.divf %168, %169 : vector<2x128xf32>
    %171 = math.tanh %165 : vector<2x128xf32>
    %172 = vector.extract_strided_slice %170 {offsets = [0, 0], sizes = [2, 32], strides = [1, 1]} : vector<2x128xf32> to vector<2x32xf32>
    %173 = vector.extract_strided_slice %170 {offsets = [0, 32], sizes = [2, 32], strides = [1, 1]} : vector<2x128xf32> to vector<2x32xf32>
    %174 = vector.extract_strided_slice %171 {offsets = [0, 64], sizes = [2, 32], strides = [1, 1]} : vector<2x128xf32> to vector<2x32xf32>
    %175 = vector.extract_strided_slice %170 {offsets = [0, 96], sizes = [2, 32], strides = [1, 1]} : vector<2x128xf32> to vector<2x32xf32>
    %176 = arith.mulf %173, %129 : vector<2x32xf32>
    %177 = arith.mulf %172, %174 : vector<2x32xf32>
    %178 = arith.addf %176, %177 : vector<2x32xf32>
    %179 = math.tanh %178 : vector<2x32xf32>
    %180 = arith.mulf %175, %179 : vector<2x32xf32>
    %c0_84 = arith.constant 0 : index
    %c0_85 = arith.constant 0 : index
    %181 = vector.load %arg6[%c0_84, %c0_85] : memref<32x128xf32, #tpu.memory_space<vmem>>, vector<32x128xf32>
    %c0_86 = arith.constant 0 : index
    %c0_87 = arith.constant 0 : index
    %182 = vector.load %arg7[%c0_86, %c0_87] : memref<32x128xf32, #tpu.memory_space<vmem>>, vector<32x128xf32>
    %c0_88 = arith.constant 0 : index
    %c0_89 = arith.constant 0 : index
    %183 = vector.load %arg8[%c0_88, %c0_89] : memref<1x128xf32, #tpu.memory_space<vmem>>, vector<1x128xf32>
    %cst_90 = arith.constant dense<0.000000e+00> : vector<2x128xf32>
    %184 = tpu.matmul %180, %181, %cst_90 {dimension_numbers = #tpu.dot_dimension_numbers<[1], [0], [0], [1], [0, 0, 1, 1], [], []>} : vector<2x32xf32>, vector<32x128xf32>, vector<2x128xf32> -> vector<2x128xf32>
    %cst_91 = arith.constant dense<0.000000e+00> : vector<2x128xf32>
    %185 = tpu.matmul %154, %182, %cst_91 {dimension_numbers = #tpu.dot_dimension_numbers<[1], [0], [0], [1], [0, 0, 1, 1], [], []>} : vector<2x32xf32>, vector<32x128xf32>, vector<2x128xf32> -> vector<2x128xf32>
    %186 = arith.addf %184, %185 : vector<2x128xf32>
    %187 = vector.broadcast %183 : vector<1x128xf32> to vector<2x128xf32>
    %188 = arith.addf %186, %187 : vector<2x128xf32>
    %189 = arith.negf %188 : vector<2x128xf32>
    %190 = math.exp %189 : vector<2x128xf32>
    %cst_92 = arith.constant 1.000000e+00 : f32
    %191 = vector.broadcast %cst_92 : f32 to vector<2x128xf32>
    %192 = arith.addf %191, %190 : vector<2x128xf32>
    %193 = arith.divf %191, %192 : vector<2x128xf32>
    %194 = math.tanh %188 : vector<2x128xf32>
    %195 = vector.extract_strided_slice %193 {offsets = [0, 0], sizes = [2, 32], strides = [1, 1]} : vector<2x128xf32> to vector<2x32xf32>
    %196 = vector.extract_strided_slice %193 {offsets = [0, 32], sizes = [2, 32], strides = [1, 1]} : vector<2x128xf32> to vector<2x32xf32>
    %197 = vector.extract_strided_slice %194 {offsets = [0, 64], sizes = [2, 32], strides = [1, 1]} : vector<2x128xf32> to vector<2x32xf32>
    %198 = vector.extract_strided_slice %193 {offsets = [0, 96], sizes = [2, 32], strides = [1, 1]} : vector<2x128xf32> to vector<2x32xf32>
    %199 = arith.mulf %196, %152 : vector<2x32xf32>
    %200 = arith.mulf %195, %197 : vector<2x32xf32>
    %201 = arith.addf %199, %200 : vector<2x32xf32>
    %202 = math.tanh %201 : vector<2x32xf32>
    %203 = arith.mulf %198, %202 : vector<2x32xf32>
    %c4_i32 = arith.constant 4 : i32
    %204 = arith.index_cast %c4_i32 : i32 to index
    %c0_93 = arith.constant 0 : index
    %c0_94 = arith.constant 0 : index
    %205 = vector.load %arg1[%204, %c0_93, %c0_94] : memref<8x2x64xf32, #tpu.memory_space<vmem>>, vector<1x2x64xf32>
    %206 = vector.shape_cast %205 : vector<1x2x64xf32> to vector<2x64xf32>
    %c0_95 = arith.constant 0 : index
    %c0_96 = arith.constant 0 : index
    %207 = vector.load %arg3[%c0_95, %c0_96] : memref<64x128xf32, #tpu.memory_space<vmem>>, vector<64x128xf32>
    %c0_97 = arith.constant 0 : index
    %c0_98 = arith.constant 0 : index
    %208 = vector.load %arg4[%c0_97, %c0_98] : memref<32x128xf32, #tpu.memory_space<vmem>>, vector<32x128xf32>
    %c0_99 = arith.constant 0 : index
    %c0_100 = arith.constant 0 : index
    %209 = vector.load %arg5[%c0_99, %c0_100] : memref<1x128xf32, #tpu.memory_space<vmem>>, vector<1x128xf32>
    %cst_101 = arith.constant dense<0.000000e+00> : vector<2x128xf32>
    %210 = tpu.matmul %206, %207, %cst_101 {dimension_numbers = #tpu.dot_dimension_numbers<[1], [0], [0], [1], [0, 0, 1, 1], [], []>} : vector<2x64xf32>, vector<64x128xf32>, vector<2x128xf32> -> vector<2x128xf32>
    %cst_102 = arith.constant dense<0.000000e+00> : vector<2x128xf32>
    %211 = tpu.matmul %180, %208, %cst_102 {dimension_numbers = #tpu.dot_dimension_numbers<[1], [0], [0], [1], [0, 0, 1, 1], [], []>} : vector<2x32xf32>, vector<32x128xf32>, vector<2x128xf32> -> vector<2x128xf32>
    %212 = arith.addf %210, %211 : vector<2x128xf32>
    %213 = vector.broadcast %209 : vector<1x128xf32> to vector<2x128xf32>
    %214 = arith.addf %212, %213 : vector<2x128xf32>
    %215 = arith.negf %214 : vector<2x128xf32>
    %216 = math.exp %215 : vector<2x128xf32>
    %cst_103 = arith.constant 1.000000e+00 : f32
    %217 = vector.broadcast %cst_103 : f32 to vector<2x128xf32>
    %218 = arith.addf %217, %216 : vector<2x128xf32>
    %219 = arith.divf %217, %218 : vector<2x128xf32>
    %220 = math.tanh %214 : vector<2x128xf32>
    %221 = vector.extract_strided_slice %219 {offsets = [0, 0], sizes = [2, 32], strides = [1, 1]} : vector<2x128xf32> to vector<2x32xf32>
    %222 = vector.extract_strided_slice %219 {offsets = [0, 32], sizes = [2, 32], strides = [1, 1]} : vector<2x128xf32> to vector<2x32xf32>
    %223 = vector.extract_strided_slice %220 {offsets = [0, 64], sizes = [2, 32], strides = [1, 1]} : vector<2x128xf32> to vector<2x32xf32>
    %224 = vector.extract_strided_slice %219 {offsets = [0, 96], sizes = [2, 32], strides = [1, 1]} : vector<2x128xf32> to vector<2x32xf32>
    %225 = arith.mulf %222, %178 : vector<2x32xf32>
    %226 = arith.mulf %221, %223 : vector<2x32xf32>
    %227 = arith.addf %225, %226 : vector<2x32xf32>
    %228 = math.tanh %227 : vector<2x32xf32>
    %229 = arith.mulf %224, %228 : vector<2x32xf32>
    %c0_104 = arith.constant 0 : index
    %c0_105 = arith.constant 0 : index
    %230 = vector.load %arg6[%c0_104, %c0_105] : memref<32x128xf32, #tpu.memory_space<vmem>>, vector<32x128xf32>
    %c0_106 = arith.constant 0 : index
    %c0_107 = arith.constant 0 : index
    %231 = vector.load %arg7[%c0_106, %c0_107] : memref<32x128xf32, #tpu.memory_space<vmem>>, vector<32x128xf32>
    %c0_108 = arith.constant 0 : index
    %c0_109 = arith.constant 0 : index
    %232 = vector.load %arg8[%c0_108, %c0_109] : memref<1x128xf32, #tpu.memory_space<vmem>>, vector<1x128xf32>
    %cst_110 = arith.constant dense<0.000000e+00> : vector<2x128xf32>
    %233 = tpu.matmul %229, %230, %cst_110 {dimension_numbers = #tpu.dot_dimension_numbers<[1], [0], [0], [1], [0, 0, 1, 1], [], []>} : vector<2x32xf32>, vector<32x128xf32>, vector<2x128xf32> -> vector<2x128xf32>
    %cst_111 = arith.constant dense<0.000000e+00> : vector<2x128xf32>
    %234 = tpu.matmul %203, %231, %cst_111 {dimension_numbers = #tpu.dot_dimension_numbers<[1], [0], [0], [1], [0, 0, 1, 1], [], []>} : vector<2x32xf32>, vector<32x128xf32>, vector<2x128xf32> -> vector<2x128xf32>
    %235 = arith.addf %233, %234 : vector<2x128xf32>
    %236 = vector.broadcast %232 : vector<1x128xf32> to vector<2x128xf32>
    %237 = arith.addf %235, %236 : vector<2x128xf32>
    %238 = arith.negf %237 : vector<2x128xf32>
    %239 = math.exp %238 : vector<2x128xf32>
    %cst_112 = arith.constant 1.000000e+00 : f32
    %240 = vector.broadcast %cst_112 : f32 to vector<2x128xf32>
    %241 = arith.addf %240, %239 : vector<2x128xf32>
    %242 = arith.divf %240, %241 : vector<2x128xf32>
    %243 = math.tanh %237 : vector<2x128xf32>
    %244 = vector.extract_strided_slice %242 {offsets = [0, 0], sizes = [2, 32], strides = [1, 1]} : vector<2x128xf32> to vector<2x32xf32>
    %245 = vector.extract_strided_slice %242 {offsets = [0, 32], sizes = [2, 32], strides = [1, 1]} : vector<2x128xf32> to vector<2x32xf32>
    %246 = vector.extract_strided_slice %243 {offsets = [0, 64], sizes = [2, 32], strides = [1, 1]} : vector<2x128xf32> to vector<2x32xf32>
    %247 = vector.extract_strided_slice %242 {offsets = [0, 96], sizes = [2, 32], strides = [1, 1]} : vector<2x128xf32> to vector<2x32xf32>
    %248 = arith.mulf %245, %201 : vector<2x32xf32>
    %249 = arith.mulf %244, %246 : vector<2x32xf32>
    %250 = arith.addf %248, %249 : vector<2x32xf32>
    %251 = math.tanh %250 : vector<2x32xf32>
    %252 = arith.mulf %247, %251 : vector<2x32xf32>
    %c5_i32 = arith.constant 5 : i32
    %253 = arith.index_cast %c5_i32 : i32 to index
    %c0_113 = arith.constant 0 : index
    %c0_114 = arith.constant 0 : index
    %254 = vector.load %arg1[%253, %c0_113, %c0_114] : memref<8x2x64xf32, #tpu.memory_space<vmem>>, vector<1x2x64xf32>
    %255 = vector.shape_cast %254 : vector<1x2x64xf32> to vector<2x64xf32>
    %c0_115 = arith.constant 0 : index
    %c0_116 = arith.constant 0 : index
    %256 = vector.load %arg3[%c0_115, %c0_116] : memref<64x128xf32, #tpu.memory_space<vmem>>, vector<64x128xf32>
    %c0_117 = arith.constant 0 : index
    %c0_118 = arith.constant 0 : index
    %257 = vector.load %arg4[%c0_117, %c0_118] : memref<32x128xf32, #tpu.memory_space<vmem>>, vector<32x128xf32>
    %c0_119 = arith.constant 0 : index
    %c0_120 = arith.constant 0 : index
    %258 = vector.load %arg5[%c0_119, %c0_120] : memref<1x128xf32, #tpu.memory_space<vmem>>, vector<1x128xf32>
    %cst_121 = arith.constant dense<0.000000e+00> : vector<2x128xf32>
    %259 = tpu.matmul %255, %256, %cst_121 {dimension_numbers = #tpu.dot_dimension_numbers<[1], [0], [0], [1], [0, 0, 1, 1], [], []>} : vector<2x64xf32>, vector<64x128xf32>, vector<2x128xf32> -> vector<2x128xf32>
    %cst_122 = arith.constant dense<0.000000e+00> : vector<2x128xf32>
    %260 = tpu.matmul %229, %257, %cst_122 {dimension_numbers = #tpu.dot_dimension_numbers<[1], [0], [0], [1], [0, 0, 1, 1], [], []>} : vector<2x32xf32>, vector<32x128xf32>, vector<2x128xf32> -> vector<2x128xf32>
    %261 = arith.addf %259, %260 : vector<2x128xf32>
    %262 = vector.broadcast %258 : vector<1x128xf32> to vector<2x128xf32>
    %263 = arith.addf %261, %262 : vector<2x128xf32>
    %264 = arith.negf %263 : vector<2x128xf32>
    %265 = math.exp %264 : vector<2x128xf32>
    %cst_123 = arith.constant 1.000000e+00 : f32
    %266 = vector.broadcast %cst_123 : f32 to vector<2x128xf32>
    %267 = arith.addf %266, %265 : vector<2x128xf32>
    %268 = arith.divf %266, %267 : vector<2x128xf32>
    %269 = math.tanh %263 : vector<2x128xf32>
    %270 = vector.extract_strided_slice %268 {offsets = [0, 0], sizes = [2, 32], strides = [1, 1]} : vector<2x128xf32> to vector<2x32xf32>
    %271 = vector.extract_strided_slice %268 {offsets = [0, 32], sizes = [2, 32], strides = [1, 1]} : vector<2x128xf32> to vector<2x32xf32>
    %272 = vector.extract_strided_slice %269 {offsets = [0, 64], sizes = [2, 32], strides = [1, 1]} : vector<2x128xf32> to vector<2x32xf32>
    %273 = vector.extract_strided_slice %268 {offsets = [0, 96], sizes = [2, 32], strides = [1, 1]} : vector<2x128xf32> to vector<2x32xf32>
    %274 = arith.mulf %271, %227 : vector<2x32xf32>
    %275 = arith.mulf %270, %272 : vector<2x32xf32>
    %276 = arith.addf %274, %275 : vector<2x32xf32>
    %277 = math.tanh %276 : vector<2x32xf32>
    %278 = arith.mulf %273, %277 : vector<2x32xf32>
    %c0_124 = arith.constant 0 : index
    %c0_125 = arith.constant 0 : index
    %279 = vector.load %arg6[%c0_124, %c0_125] : memref<32x128xf32, #tpu.memory_space<vmem>>, vector<32x128xf32>
    %c0_126 = arith.constant 0 : index
    %c0_127 = arith.constant 0 : index
    %280 = vector.load %arg7[%c0_126, %c0_127] : memref<32x128xf32, #tpu.memory_space<vmem>>, vector<32x128xf32>
    %c0_128 = arith.constant 0 : index
    %c0_129 = arith.constant 0 : index
    %281 = vector.load %arg8[%c0_128, %c0_129] : memref<1x128xf32, #tpu.memory_space<vmem>>, vector<1x128xf32>
    %cst_130 = arith.constant dense<0.000000e+00> : vector<2x128xf32>
    %282 = tpu.matmul %278, %279, %cst_130 {dimension_numbers = #tpu.dot_dimension_numbers<[1], [0], [0], [1], [0, 0, 1, 1], [], []>} : vector<2x32xf32>, vector<32x128xf32>, vector<2x128xf32> -> vector<2x128xf32>
    %cst_131 = arith.constant dense<0.000000e+00> : vector<2x128xf32>
    %283 = tpu.matmul %252, %280, %cst_131 {dimension_numbers = #tpu.dot_dimension_numbers<[1], [0], [0], [1], [0, 0, 1, 1], [], []>} : vector<2x32xf32>, vector<32x128xf32>, vector<2x128xf32> -> vector<2x128xf32>
    %284 = arith.addf %282, %283 : vector<2x128xf32>
    %285 = vector.broadcast %281 : vector<1x128xf32> to vector<2x128xf32>
    %286 = arith.addf %284, %285 : vector<2x128xf32>
    %287 = arith.negf %286 : vector<2x128xf32>
    %288 = math.exp %287 : vector<2x128xf32>
    %cst_132 = arith.constant 1.000000e+00 : f32
    %289 = vector.broadcast %cst_132 : f32 to vector<2x128xf32>
    %290 = arith.addf %289, %288 : vector<2x128xf32>
    %291 = arith.divf %289, %290 : vector<2x128xf32>
    %292 = math.tanh %286 : vector<2x128xf32>
    %293 = vector.extract_strided_slice %291 {offsets = [0, 0], sizes = [2, 32], strides = [1, 1]} : vector<2x128xf32> to vector<2x32xf32>
    %294 = vector.extract_strided_slice %291 {offsets = [0, 32], sizes = [2, 32], strides = [1, 1]} : vector<2x128xf32> to vector<2x32xf32>
    %295 = vector.extract_strided_slice %292 {offsets = [0, 64], sizes = [2, 32], strides = [1, 1]} : vector<2x128xf32> to vector<2x32xf32>
    %296 = vector.extract_strided_slice %291 {offsets = [0, 96], sizes = [2, 32], strides = [1, 1]} : vector<2x128xf32> to vector<2x32xf32>
    %297 = arith.mulf %294, %250 : vector<2x32xf32>
    %298 = arith.mulf %293, %295 : vector<2x32xf32>
    %299 = arith.addf %297, %298 : vector<2x32xf32>
    %300 = math.tanh %299 : vector<2x32xf32>
    %301 = arith.mulf %296, %300 : vector<2x32xf32>
    %c6_i32 = arith.constant 6 : i32
    %302 = arith.index_cast %c6_i32 : i32 to index
    %c0_133 = arith.constant 0 : index
    %c0_134 = arith.constant 0 : index
    %303 = vector.load %arg1[%302, %c0_133, %c0_134] : memref<8x2x64xf32, #tpu.memory_space<vmem>>, vector<1x2x64xf32>
    %304 = vector.shape_cast %303 : vector<1x2x64xf32> to vector<2x64xf32>
    %c0_135 = arith.constant 0 : index
    %c0_136 = arith.constant 0 : index
    %305 = vector.load %arg3[%c0_135, %c0_136] : memref<64x128xf32, #tpu.memory_space<vmem>>, vector<64x128xf32>
    %c0_137 = arith.constant 0 : index
    %c0_138 = arith.constant 0 : index
    %306 = vector.load %arg4[%c0_137, %c0_138] : memref<32x128xf32, #tpu.memory_space<vmem>>, vector<32x128xf32>
    %c0_139 = arith.constant 0 : index
    %c0_140 = arith.constant 0 : index
    %307 = vector.load %arg5[%c0_139, %c0_140] : memref<1x128xf32, #tpu.memory_space<vmem>>, vector<1x128xf32>
    %cst_141 = arith.constant dense<0.000000e+00> : vector<2x128xf32>
    %308 = tpu.matmul %304, %305, %cst_141 {dimension_numbers = #tpu.dot_dimension_numbers<[1], [0], [0], [1], [0, 0, 1, 1], [], []>} : vector<2x64xf32>, vector<64x128xf32>, vector<2x128xf32> -> vector<2x128xf32>
    %cst_142 = arith.constant dense<0.000000e+00> : vector<2x128xf32>
    %309 = tpu.matmul %278, %306, %cst_142 {dimension_numbers = #tpu.dot_dimension_numbers<[1], [0], [0], [1], [0, 0, 1, 1], [], []>} : vector<2x32xf32>, vector<32x128xf32>, vector<2x128xf32> -> vector<2x128xf32>
    %310 = arith.addf %308, %309 : vector<2x128xf32>
    %311 = vector.broadcast %307 : vector<1x128xf32> to vector<2x128xf32>
    %312 = arith.addf %310, %311 : vector<2x128xf32>
    %313 = arith.negf %312 : vector<2x128xf32>
    %314 = math.exp %313 : vector<2x128xf32>
    %cst_143 = arith.constant 1.000000e+00 : f32
    %315 = vector.broadcast %cst_143 : f32 to vector<2x128xf32>
    %316 = arith.addf %315, %314 : vector<2x128xf32>
    %317 = arith.divf %315, %316 : vector<2x128xf32>
    %318 = math.tanh %312 : vector<2x128xf32>
    %319 = vector.extract_strided_slice %317 {offsets = [0, 0], sizes = [2, 32], strides = [1, 1]} : vector<2x128xf32> to vector<2x32xf32>
    %320 = vector.extract_strided_slice %317 {offsets = [0, 32], sizes = [2, 32], strides = [1, 1]} : vector<2x128xf32> to vector<2x32xf32>
    %321 = vector.extract_strided_slice %318 {offsets = [0, 64], sizes = [2, 32], strides = [1, 1]} : vector<2x128xf32> to vector<2x32xf32>
    %322 = vector.extract_strided_slice %317 {offsets = [0, 96], sizes = [2, 32], strides = [1, 1]} : vector<2x128xf32> to vector<2x32xf32>
    %323 = arith.mulf %320, %276 : vector<2x32xf32>
    %324 = arith.mulf %319, %321 : vector<2x32xf32>
    %325 = arith.addf %323, %324 : vector<2x32xf32>
    %326 = math.tanh %325 : vector<2x32xf32>
    %327 = arith.mulf %322, %326 : vector<2x32xf32>
    %c0_144 = arith.constant 0 : index
    %c0_145 = arith.constant 0 : index
    %328 = vector.load %arg6[%c0_144, %c0_145] : memref<32x128xf32, #tpu.memory_space<vmem>>, vector<32x128xf32>
    %c0_146 = arith.constant 0 : index
    %c0_147 = arith.constant 0 : index
    %329 = vector.load %arg7[%c0_146, %c0_147] : memref<32x128xf32, #tpu.memory_space<vmem>>, vector<32x128xf32>
    %c0_148 = arith.constant 0 : index
    %c0_149 = arith.constant 0 : index
    %330 = vector.load %arg8[%c0_148, %c0_149] : memref<1x128xf32, #tpu.memory_space<vmem>>, vector<1x128xf32>
    %cst_150 = arith.constant dense<0.000000e+00> : vector<2x128xf32>
    %331 = tpu.matmul %327, %328, %cst_150 {dimension_numbers = #tpu.dot_dimension_numbers<[1], [0], [0], [1], [0, 0, 1, 1], [], []>} : vector<2x32xf32>, vector<32x128xf32>, vector<2x128xf32> -> vector<2x128xf32>
    %cst_151 = arith.constant dense<0.000000e+00> : vector<2x128xf32>
    %332 = tpu.matmul %301, %329, %cst_151 {dimension_numbers = #tpu.dot_dimension_numbers<[1], [0], [0], [1], [0, 0, 1, 1], [], []>} : vector<2x32xf32>, vector<32x128xf32>, vector<2x128xf32> -> vector<2x128xf32>
    %333 = arith.addf %331, %332 : vector<2x128xf32>
    %334 = vector.broadcast %330 : vector<1x128xf32> to vector<2x128xf32>
    %335 = arith.addf %333, %334 : vector<2x128xf32>
    %336 = arith.negf %335 : vector<2x128xf32>
    %337 = math.exp %336 : vector<2x128xf32>
    %cst_152 = arith.constant 1.000000e+00 : f32
    %338 = vector.broadcast %cst_152 : f32 to vector<2x128xf32>
    %339 = arith.addf %338, %337 : vector<2x128xf32>
    %340 = arith.divf %338, %339 : vector<2x128xf32>
    %341 = math.tanh %335 : vector<2x128xf32>
    %342 = vector.extract_strided_slice %340 {offsets = [0, 0], sizes = [2, 32], strides = [1, 1]} : vector<2x128xf32> to vector<2x32xf32>
    %343 = vector.extract_strided_slice %340 {offsets = [0, 32], sizes = [2, 32], strides = [1, 1]} : vector<2x128xf32> to vector<2x32xf32>
    %344 = vector.extract_strided_slice %341 {offsets = [0, 64], sizes = [2, 32], strides = [1, 1]} : vector<2x128xf32> to vector<2x32xf32>
    %345 = vector.extract_strided_slice %340 {offsets = [0, 96], sizes = [2, 32], strides = [1, 1]} : vector<2x128xf32> to vector<2x32xf32>
    %346 = arith.mulf %343, %299 : vector<2x32xf32>
    %347 = arith.mulf %342, %344 : vector<2x32xf32>
    %348 = arith.addf %346, %347 : vector<2x32xf32>
    %349 = math.tanh %348 : vector<2x32xf32>
    %350 = arith.mulf %345, %349 : vector<2x32xf32>
    %c7_i32 = arith.constant 7 : i32
    %351 = arith.index_cast %c7_i32 : i32 to index
    %c0_153 = arith.constant 0 : index
    %c0_154 = arith.constant 0 : index
    %352 = vector.load %arg1[%351, %c0_153, %c0_154] : memref<8x2x64xf32, #tpu.memory_space<vmem>>, vector<1x2x64xf32>
    %353 = vector.shape_cast %352 : vector<1x2x64xf32> to vector<2x64xf32>
    %c0_155 = arith.constant 0 : index
    %c0_156 = arith.constant 0 : index
    %354 = vector.load %arg3[%c0_155, %c0_156] : memref<64x128xf32, #tpu.memory_space<vmem>>, vector<64x128xf32>
    %c0_157 = arith.constant 0 : index
    %c0_158 = arith.constant 0 : index
    %355 = vector.load %arg4[%c0_157, %c0_158] : memref<32x128xf32, #tpu.memory_space<vmem>>, vector<32x128xf32>
    %c0_159 = arith.constant 0 : index
    %c0_160 = arith.constant 0 : index
    %356 = vector.load %arg5[%c0_159, %c0_160] : memref<1x128xf32, #tpu.memory_space<vmem>>, vector<1x128xf32>
    %cst_161 = arith.constant dense<0.000000e+00> : vector<2x128xf32>
    %357 = tpu.matmul %353, %354, %cst_161 {dimension_numbers = #tpu.dot_dimension_numbers<[1], [0], [0], [1], [0, 0, 1, 1], [], []>} : vector<2x64xf32>, vector<64x128xf32>, vector<2x128xf32> -> vector<2x128xf32>
    %cst_162 = arith.constant dense<0.000000e+00> : vector<2x128xf32>
    %358 = tpu.matmul %327, %355, %cst_162 {dimension_numbers = #tpu.dot_dimension_numbers<[1], [0], [0], [1], [0, 0, 1, 1], [], []>} : vector<2x32xf32>, vector<32x128xf32>, vector<2x128xf32> -> vector<2x128xf32>
    %359 = arith.addf %357, %358 : vector<2x128xf32>
    %360 = vector.broadcast %356 : vector<1x128xf32> to vector<2x128xf32>
    %361 = arith.addf %359, %360 : vector<2x128xf32>
    %362 = arith.negf %361 : vector<2x128xf32>
    %363 = math.exp %362 : vector<2x128xf32>
    %cst_163 = arith.constant 1.000000e+00 : f32
    %364 = vector.broadcast %cst_163 : f32 to vector<2x128xf32>
    %365 = arith.addf %364, %363 : vector<2x128xf32>
    %366 = arith.divf %364, %365 : vector<2x128xf32>
    %367 = math.tanh %361 : vector<2x128xf32>
    %368 = vector.extract_strided_slice %366 {offsets = [0, 0], sizes = [2, 32], strides = [1, 1]} : vector<2x128xf32> to vector<2x32xf32>
    %369 = vector.extract_strided_slice %366 {offsets = [0, 32], sizes = [2, 32], strides = [1, 1]} : vector<2x128xf32> to vector<2x32xf32>
    %370 = vector.extract_strided_slice %367 {offsets = [0, 64], sizes = [2, 32], strides = [1, 1]} : vector<2x128xf32> to vector<2x32xf32>
    %371 = vector.extract_strided_slice %366 {offsets = [0, 96], sizes = [2, 32], strides = [1, 1]} : vector<2x128xf32> to vector<2x32xf32>
    %372 = arith.mulf %369, %325 : vector<2x32xf32>
    %373 = arith.mulf %368, %370 : vector<2x32xf32>
    %374 = arith.addf %372, %373 : vector<2x32xf32>
    %375 = math.tanh %374 : vector<2x32xf32>
    %376 = arith.mulf %371, %375 : vector<2x32xf32>
    %c0_164 = arith.constant 0 : index
    %c0_165 = arith.constant 0 : index
    %377 = vector.load %arg6[%c0_164, %c0_165] : memref<32x128xf32, #tpu.memory_space<vmem>>, vector<32x128xf32>
    %c0_166 = arith.constant 0 : index
    %c0_167 = arith.constant 0 : index
    %378 = vector.load %arg7[%c0_166, %c0_167] : memref<32x128xf32, #tpu.memory_space<vmem>>, vector<32x128xf32>
    %c0_168 = arith.constant 0 : index
    %c0_169 = arith.constant 0 : index
    %379 = vector.load %arg8[%c0_168, %c0_169] : memref<1x128xf32, #tpu.memory_space<vmem>>, vector<1x128xf32>
    %cst_170 = arith.constant dense<0.000000e+00> : vector<2x128xf32>
    %380 = tpu.matmul %376, %377, %cst_170 {dimension_numbers = #tpu.dot_dimension_numbers<[1], [0], [0], [1], [0, 0, 1, 1], [], []>} : vector<2x32xf32>, vector<32x128xf32>, vector<2x128xf32> -> vector<2x128xf32>
    %cst_171 = arith.constant dense<0.000000e+00> : vector<2x128xf32>
    %381 = tpu.matmul %350, %378, %cst_171 {dimension_numbers = #tpu.dot_dimension_numbers<[1], [0], [0], [1], [0, 0, 1, 1], [], []>} : vector<2x32xf32>, vector<32x128xf32>, vector<2x128xf32> -> vector<2x128xf32>
    %382 = arith.addf %380, %381 : vector<2x128xf32>
    %383 = vector.broadcast %379 : vector<1x128xf32> to vector<2x128xf32>
    %384 = arith.addf %382, %383 : vector<2x128xf32>
    %385 = arith.negf %384 : vector<2x128xf32>
    %386 = math.exp %385 : vector<2x128xf32>
    %cst_172 = arith.constant 1.000000e+00 : f32
    %387 = vector.broadcast %cst_172 : f32 to vector<2x128xf32>
    %388 = arith.addf %387, %386 : vector<2x128xf32>
    %389 = arith.divf %387, %388 : vector<2x128xf32>
    %390 = math.tanh %384 : vector<2x128xf32>
    %391 = vector.extract_strided_slice %389 {offsets = [0, 0], sizes = [2, 32], strides = [1, 1]} : vector<2x128xf32> to vector<2x32xf32>
    %392 = vector.extract_strided_slice %389 {offsets = [0, 32], sizes = [2, 32], strides = [1, 1]} : vector<2x128xf32> to vector<2x32xf32>
    %393 = vector.extract_strided_slice %390 {offsets = [0, 64], sizes = [2, 32], strides = [1, 1]} : vector<2x128xf32> to vector<2x32xf32>
    %394 = vector.extract_strided_slice %389 {offsets = [0, 96], sizes = [2, 32], strides = [1, 1]} : vector<2x128xf32> to vector<2x32xf32>
    %395 = arith.mulf %392, %348 : vector<2x32xf32>
    %396 = arith.mulf %391, %393 : vector<2x32xf32>
    %397 = arith.addf %395, %396 : vector<2x32xf32>
    %398 = math.tanh %397 : vector<2x32xf32>
    %399 = arith.mulf %394, %398 : vector<2x32xf32>
    %c8_i32 = arith.constant 8 : i32
    %c0_173 = arith.constant 0 : index
    %c0_174 = arith.constant 0 : index
    %400 = vector.load %arg9[%c0_173, %c0_174] : memref<32x8xf32, #tpu.memory_space<vmem>>, vector<32x8xf32>
    %cst_175 = arith.constant dense<0.000000e+00> : vector<2x8xf32>
    %401 = tpu.matmul %399, %400, %cst_175 {dimension_numbers = #tpu.dot_dimension_numbers<[1], [0], [0], [1], [0, 0, 1, 1], [], []>} : vector<2x32xf32>, vector<32x8xf32>, vector<2x8xf32> -> vector<2x8xf32>
    %c0_176 = arith.constant 0 : index
    %c0_177 = arith.constant 0 : index
    %402 = vector.load %arg10[%c0_176, %c0_177] : memref<1x8xf32, #tpu.memory_space<vmem>>, vector<1x8xf32>
    %403 = vector.broadcast %402 : vector<1x8xf32> to vector<2x8xf32>
    %404 = arith.addf %401, %403 : vector<2x8xf32>
    %c0_178 = arith.constant 0 : index
    %c0_179 = arith.constant 0 : index
    %405 = vector.load %arg11[%c0_178, %c0_179] : memref<2x8xf32, #tpu.memory_space<vmem>>, vector<2x8xf32>
    tpu.vector_store %arg11[%c0_178, %c0_179], %404 {strides = array<i32>} : memref<2x8xf32, #tpu.memory_space<vmem>>, vector<2x8xf32>,
    %c0_180 = arith.constant 0 : index
    %c0_181 = arith.constant 0 : index
    %c0_182 = arith.constant 0 : index
    %c0_183 = arith.constant 0 : index
    %406 = vector.load %arg12[%c0_180, %c0_181, %c0_182, %c0_183] : memref<2x2x2x32xf32, #tpu.memory_space<vmem>>, vector<1x1x2x32xf32>
    %407 = vector.shape_cast %406 : vector<1x1x2x32xf32> to vector<2x32xf32>
    %408 = vector.shape_cast %376 : vector<2x32xf32> to vector<1x1x2x32xf32>
    tpu.vector_store %arg12[%c0_180, %c0_181, %c0_182, %c0_183], %408 {strides = array<i32>} : memref<2x2x2x32xf32, #tpu.memory_space<vmem>>, vector<1x1x2x32xf32>,
    %c1_184 = arith.constant 1 : index
    %c0_185 = arith.constant 0 : index
    %c0_186 = arith.constant 0 : index
    %c0_187 = arith.constant 0 : index
    %409 = vector.load %arg12[%c1_184, %c0_185, %c0_186, %c0_187] : memref<2x2x2x32xf32, #tpu.memory_space<vmem>>, vector<1x1x2x32xf32>
    %410 = vector.shape_cast %409 : vector<1x1x2x32xf32> to vector<2x32xf32>
    %411 = vector.shape_cast %374 : vector<2x32xf32> to vector<1x1x2x32xf32>
    tpu.vector_store %arg12[%c1_184, %c0_185, %c0_186, %c0_187], %411 {strides = array<i32>} : memref<2x2x2x32xf32, #tpu.memory_space<vmem>>, vector<1x1x2x32xf32>,
    %c0_188 = arith.constant 0 : index
    %c1_189 = arith.constant 1 : index
    %c0_190 = arith.constant 0 : index
    %c0_191 = arith.constant 0 : index
    %412 = vector.load %arg12[%c0_188, %c1_189, %c0_190, %c0_191] : memref<2x2x2x32xf32, #tpu.memory_space<vmem>>, vector<1x1x2x32xf32>
    %413 = vector.shape_cast %412 : vector<1x1x2x32xf32> to vector<2x32xf32>
    %414 = vector.shape_cast %399 : vector<2x32xf32> to vector<1x1x2x32xf32>
    tpu.vector_store %arg12[%c0_188, %c1_189, %c0_190, %c0_191], %414 {strides = array<i32>} : memref<2x2x2x32xf32, #tpu.memory_space<vmem>>, vector<1x1x2x32xf32>,
    %c1_192 = arith.constant 1 : index
    %c1_193 = arith.constant 1 : index
    %c0_194 = arith.constant 0 : index
    %c0_195 = arith.constant 0 : index
    %415 = vector.load %arg12[%c1_192, %c1_193, %c0_194, %c0_195] : memref<2x2x2x32xf32, #tpu.memory_space<vmem>>, vector<1x1x2x32xf32>
    %416 = vector.shape_cast %415 : vector<1x1x2x32xf32> to vector<2x32xf32>
    %417 = vector.shape_cast %397 : vector<2x32xf32> to vector<1x1x2x32xf32>
    tpu.vector_store %arg12[%c1_192, %c1_193, %c0_194, %c0_195], %417 {strides = array<i32>} : memref<2x2x2x32xf32, #tpu.memory_space<vmem>>, vector<1x1x2x32xf32>,
    return
  }
  func.func @transform_0(%arg0: i32) -> (i32, i32, i32) {
    %c0_i32 = arith.constant 0 : i32
    %c0_i32_0 = arith.constant 0 : i32
    %c0_i32_1 = arith.constant 0 : i32
    %c0_i32_2 = arith.constant 0 : i32
    return %c0_i32, %c0_i32_0, %c0_i32_1 : i32, i32, i32
  }
  func.func @transform_1(%arg0: i32) -> (i32, i32, i32, i32) {
    %c0_i32 = arith.constant 0 : i32
    %c0_i32_0 = arith.constant 0 : i32
    %c0_i32_1 = arith.constant 0 : i32
    %c0_i32_2 = arith.constant 0 : i32
    %c0_i32_3 = arith.constant 0 : i32
    return %c0_i32, %c0_i32_0, %c0_i32_1, %c0_i32_2 : i32, i32, i32, i32
  }
  func.func @transform_2(%arg0: i32) -> (i32, i32) {
    %c0_i32 = arith.constant 0 : i32
    %c0_i32_0 = arith.constant 0 : i32
    %c0_i32_1 = arith.constant 0 : i32
    return %c0_i32, %c0_i32_0 : i32, i32
  }
  func.func @transform_3(%arg0: i32) -> (i32, i32) {
    %c0_i32 = arith.constant 0 : i32
    %c0_i32_0 = arith.constant 0 : i32
    %c0_i32_1 = arith.constant 0 : i32
    return %c0_i32, %c0_i32_0 : i32, i32
  }
  func.func @transform_4(%arg0: i32) -> (i32, i32) {
    %c0_i32 = arith.constant 0 : i32
    %c0_i32_0 = arith.constant 0 : i32
    %c0_i32_1 = arith.constant 0 : i32
    return %c0_i32, %c0_i32_0 : i32, i32
  }
  func.func @transform_5(%arg0: i32) -> (i32, i32) {
    %c0_i32 = arith.constant 0 : i32
    %c0_i32_0 = arith.constant 0 : i32
    %c0_i32_1 = arith.constant 0 : i32
    return %c0_i32, %c0_i32_0 : i32, i32
  }
  func.func @transform_6(%arg0: i32) -> (i32, i32) {
    %c0_i32 = arith.constant 0 : i32
    %c0_i32_0 = arith.constant 0 : i32
    %c0_i32_1 = arith.constant 0 : i32
    return %c0_i32, %c0_i32_0 : i32, i32
  }
  func.func @transform_7(%arg0: i32) -> (i32, i32) {
    %c0_i32 = arith.constant 0 : i32
    %c0_i32_0 = arith.constant 0 : i32
    %c0_i32_1 = arith.constant 0 : i32
    return %c0_i32, %c0_i32_0 : i32, i32
  }
  func.func @transform_8(%arg0: i32) -> (i32, i32) {
    %c0_i32 = arith.constant 0 : i32
    %c0_i32_0 = arith.constant 0 : i32
    %c0_i32_1 = arith.constant 0 : i32
    return %c0_i32, %c0_i32_0 : i32, i32
  }
  func.func @transform_9(%arg0: i32) -> (i32, i32) {
    %c0_i32 = arith.constant 0 : i32
    %c0_i32_0 = arith.constant 0 : i32
    %c0_i32_1 = arith.constant 0 : i32
    return %c0_i32, %c0_i32_0 : i32, i32
  }
  func.func @transform_10(%arg0: i32) -> (i32, i32) {
    %c0_i32 = arith.constant 0 : i32
    %c0_i32_0 = arith.constant 0 : i32
    %c0_i32_1 = arith.constant 0 : i32
    return %c0_i32, %c0_i32_0 : i32, i32
  }
  func.func @transform_11(%arg0: i32) -> (i32, i32, i32, i32) {
    %c0_i32 = arith.constant 0 : i32
    %c0_i32_0 = arith.constant 0 : i32
    %c0_i32_1 = arith.constant 0 : i32
    %c0_i32_2 = arith.constant 0 : i32
    %c0_i32_3 = arith.constant 0 : i32
    return %c0_i32, %c0_i32_0, %c0_i32_1, %c0_i32_2 : i32, i32, i32, i32
  }
}

</mosaic_0001>

<bundles_post_ra>
// kernel: decoder_forward.1
= control target key start
LH: loop header
LB: loop body
LE: loop exit
PB: predicated region body
PF: predicated region fallthrough
CT: control target
= control target key end

     0   :  { %17 = vsyncpa [#allocation3], 0  ;;  %s2486_s0 = inlined_call_operand.vmem [shape: f32[8,2,64], index: 0, kind: input, shape index: {}]   ;;  %s2487_s1 = inlined_call_operand.vmem [shape: f32[2,2,2,32], index: 1, kind: input, shape index: {}, may-alias: {1,11}]   ;;  %s2488_s2 = inlined_call_operand.vmem [shape: f32[64,128], index: 2, kind: input, shape index: {}]   ;;  %s2489_s3 = inlined_call_operand.hbm [shape: f32[32,128], index: 3, kind: input, shape index: {}]   ;;  %s2490_s4 = inlined_call_operand.vmem [shape: f32[1,128], index: 4, kind: input, shape index: {}]   ;;  %s2491_s5 = inlined_call_operand.hbm [shape: f32[32,128], index: 5, kind: input, shape index: {}]   ;;  %s2492_s6 = inlined_call_operand.hbm [shape: f32[32,128], index: 6, kind: input, shape index: {}]   ;;  %s2493_s7 = inlined_call_operand.vmem [shape: f32[1,128], index: 7, kind: input, shape index: {}]   ;;  %s2494_s8 = inlined_call_operand.vmem [shape: f32[32,8], index: 8, kind: input, shape index: {}]   ;;  %s2495_s9 = inlined_call_operand.vmem [shape: f32[1,8], index: 9, kind: input, shape index: {}]   ;;  %s2496_s10 = inlined_call_operand.hbm [shape: f32[2,8], index: 10, kind: output, shape index: {0}]   ;;  %s2497_s11 = inlined_call_operand.vmem [shape: f32[2,2,2,32], index: 11, kind: output, shape index: {1}, may-alias: {1,11}]  }
   0x1   :  { %18 = vsyncpa [#allocation6], 0 }
   0x2   :  { %19 = vsyncpa [#allocation4], 0  ;;  %s45_s19 = sshll.u32 %s2491_s5, 4  ;;  %s1895_s20 = smov [#allocation5]   ;;  %s46_s19 = int_to_ptr.hbm [resolvable:$true] %s45_s19 }
   0x3   :  { %s47_s21 = sshll.u32 %s1895_s20, 4  ;;  %s30_s24 = sshll.u32 %s2489_s3, 4  ;;  %s48_s21 = int_to_ptr.vmem [resolvable:$true] %s47_s21  ;;  %s31_s24 = int_to_ptr.hbm [resolvable:$true] %s30_s24 }
   0x4   :  { %s1896_s25 = smov 128   ;;  %s1897_s26 = smov 8  }
   0x5   :  { %53 = dma.hbm_to_vmem [thread:$0]  %s46_s19, 512, %s48_s21, [#allocation6], %s1896_s25, %s1896_s25, %s1897_s26  }
   0x6   :  { %s1898_s27 = smov [#allocation2]   ;;  %s58_s12 = sshll.u32 %s2492_s6, 4  ;;  %s59_s12 = int_to_ptr.hbm [resolvable:$true] %s58_s12 }
   0x7   :  { %s32_s28 = sshll.u32 %s1898_s27, 4  ;;  %s1899_s5 = smov [#allocation7]   ;;  %s33_s28 = int_to_ptr.vmem [resolvable:$true] %s32_s28 }
   0x8   :  { %38 = dma.hbm_to_vmem [thread:$0]  %s31_s24, 512, %s33_s28, [#allocation3], %s1896_s25, %s1896_s25, %s1897_s26  }
   0x9   :  { %s60_s13 = sshll.u32 %s1899_s5, 4  ;;  %s61_s13 = int_to_ptr.vmem [resolvable:$true] %s60_s13 }
   0xa   :  { %66 = dma.hbm_to_vmem [thread:$0]  %s59_s12, 512, %s61_s13, [#allocation6], %s1896_s25, %s1896_s25, %s1897_s26  }
   0xb   :  { %1889 = dma.done.wait [#allocation3], 512  }
   0xc   :  { %1890 = vsyncadd [#allocation3], 4294966784 }
   0xd   :  { %1891 = dma.done.wait [#allocation6], 1024  }
   0xe   :  { %1892 = vsyncadd [#allocation6], 4294966272  ;;  %v1976_v0 = vld [vmem:[%s2488_s2 + $0x38] sm:$0xff]  ;;  %v1981_v1 = vld [vmem:[%s2488_s2 + $0x30] sm:$0xff]  ;;  %vm106_vm0 = vcmask 261120   ;;  %vm130_vm1 = vcmask 523264  }
   0xf   :  { %142 = vmatpush.msra.mxu1 %v1976_v0  ;;  %v1984_v2 = vld [vmem:[#allocation2 + $0x18] sm:$0xff]  ;;  %v1989_v3 = vld [vmem:[%s2488_s2 + $0x28] sm:$0xff]  ;;  %v1992_v4 = vld [vmem:[#allocation2 + $0x10] sm:$0xff]  ;;  %s1900_s3 = smov 64   ;;  %s1901_s16 = smov 32  }
  0x10   :  { %122 = vmatpush.msra.mxu0 %v1984_v2  ;;  %v1995_v5 = vld [vmem:[#allocation2 + $0x8] sm:$0xff]  ;;  %v2000_v6 = vld [vmem:[%s2488_s2 + $0x20] sm:$0xff]  ;;  %v2009_v8 = vld [vmem:[%s2488_s2 + $0x18] sm:$0xff]  ;;  %s1902_s5 = smov 96   ;;  %s1903_s26 = smov [#allocation8]  }
  0x11   :  { %143 = vmatpush.msra.mxu1 %v1981_v1  ;;  %v2004_v7 = vld [vmem:[#allocation2] sm:$0xff]  ;;  %v2019_v10 = vld [vmem:[%s2488_s2 + $0x10] sm:$0xff]  ;;  %v2027_v11 = vld [vmem:[%s2488_s2 + $0x8] sm:$0xff] }
  0x12   :  { %123 = vmatpush.msra.mxu0 %v1992_v4  ;;  %v85_v9 = vld [vmem:[%s2487_s1] sm:$0x3]  ;;  %v1574_v20 = vld [vmem:[%s2487_s1 + $0x4] sm:$0x3]  ;;  %v2065_v41 = vld [vmem:[#allocation7 + $0x18] sm:$0xff] }
  0x13   :  { %144 = vmatpush.msra.mxu1 %v1989_v3  ;;  %v2034_v12 = vld [vmem:[%s2488_s2] sm:$0xff]  ;;  %v2067_v42 = vld [vmem:[#allocation7 + $0x10] sm:$0xff]  ;;  %223 = vmatpush.msra.mxu2 %v2065_v41  ;;  %v2070_v43 = vld [vmem:[#allocation5 + $0x18] sm:$0xff] }
  0x14   :  { %124 = vmatpush.msra.mxu0 %v1995_v5  ;;  %v92_v13 = vld [vmem:[%s2486_s0] sm:$0x3]  ;;  %v2072_v44 = vld [vmem:[#allocation7 + $0x8] sm:$0xff]  ;;  %248 = vmatpush.msra.mxu3 %v2070_v43  ;;  %v2075_v45 = vld [vmem:[#allocation5 + $0x10] sm:$0xff] }
  0x15   :  { %145 = vmatpush.msra.mxu1 %v2000_v6  ;;  %v2052_v15 = vld [vmem:[%s2490_s4] ss:$0 sm:$0xff]  ;;  %224 = vmatpush.msra.mxu2 %v2067_v42  ;;  %v2079_v46 = vld [vmem:[#allocation5 + $0x8] sm:$0xff]  ;;  %v1573_v49 = vld [vmem:[%s2487_s1 + $0x2] sm:$0x3] }
  0x16   :  { %125 = vmatpush.msra.mxu0 %v2004_v7  ;;  %v2082_v47 = vld [vmem:[#allocation7] sm:$0xff]  ;;  %249 = vmatpush.msra.mxu3 %v2075_v45 }
  0x17   :  { %146 = vmatpush.msra.mxu1 %v2009_v8  ;;  %1576 = vmatmul.msk.f32.vlgmr.msra.gmra.mxu0 %vm106_vm0, %v85_v9  ;;  %v2087_v48 = vld [vmem:[#allocation5] sm:$0xff] }
  0x18   :  { %315 = vmatpush.msrb.mxu0 %v1984_v2  ;;  %225 = vmatpush.msra.mxu2 %v2072_v44  ;;  %v1582_v50 = vld [vmem:[%s2486_s0 + $0x2] sm:$0x3]  ;;  %v1575_v53 = vld [vmem:[%s2487_s1 + $0x6] sm:$0x3]  ;;  %v2148_v60 = vld [vmem:[%s2493_s7] ss:$0 sm:$0xff] }
  0x19   :  { %147 = vmatpush.msra.mxu1 %v2019_v10  ;;  %250 = vmatpush.msra.mxu3 %v2079_v46 }
  0x1a   :  { %316 = vmatpush.msrb.mxu0 %v1992_v4  ;;  %226 = vmatpush.msra.mxu2 %v2082_v47 }
  0x1b   :  { %148 = vmatpush.msra.mxu1 %v2027_v11  ;;  %251 = vmatpush.msra.mxu3 %v2087_v48 }
  0x1c   :  { %317 = vmatpush.msrb.mxu0 %v1995_v5  ;;  %334 = vmatpush.msrb.mxu2 %v1976_v0 }
  0x1d   :  { %149 = vmatpush.msra.mxu1 %v2034_v12  ;;  %1579 = vmatmul.msk.f32.vlgmr.msra.gmra.mxu2 %vm106_vm0, %v1573_v49 }
  0x1e   :  { %1577 = vmatmul.msk.f32.vlgmr.msra.gmra.mxu1 %vm130_vm1, %v92_v13  ;;  %318 = vmatpush.msrb.mxu0 %v2004_v7 }
  0x1f   :  { %486 = vmatpush.msrb.mxu1 %v1984_v2  ;;  %401 = vmatpush.msrb.mxu3 %v2065_v41 }
  0x20   :  { %426 = vmatpush.msra.mxu0 %v2070_v43  ;;  %335 = vmatpush.msrb.mxu2 %v1981_v1 }
  0x21   :  { %487 = vmatpush.msrb.mxu1 %v1992_v4  ;;  %402 = vmatpush.msrb.mxu3 %v2067_v42 }
  0x22   :  { %427 = vmatpush.msra.mxu0 %v2075_v45  ;;  %336 = vmatpush.msrb.mxu2 %v1989_v3 }
  0x23   :  { %488 = vmatpush.msrb.mxu1 %v1995_v5  ;;  %403 = vmatpush.msrb.mxu3 %v2072_v44 }
  0x24   :  { %428 = vmatpush.msra.mxu0 %v2079_v46  ;;  %337 = vmatpush.msrb.mxu2 %v2000_v6 }
  0x25   :  { %489 = vmatpush.msrb.mxu1 %v2004_v7  ;;  %404 = vmatpush.msrb.mxu3 %v2082_v47 }
  0x26   :  { %429 = vmatpush.msra.mxu0 %v2087_v48  ;;  %338 = vmatpush.msrb.mxu2 %v2009_v8 }
  0x27   :  { %597 = vmatpush.msra.mxu1 %v2070_v43 }
  0x28   :  { %339 = vmatpush.msrb.mxu2 %v2019_v10 }
  0x29   :  { %598 = vmatpush.msra.mxu1 %v2075_v45 }
  0x2a   :  { %340 = vmatpush.msrb.mxu2 %v2027_v11 }
  0x2b   :  { %599 = vmatpush.msra.mxu1 %v2079_v46 }
  0x2c   :  { %341 = vmatpush.msrb.mxu2 %v2034_v12 }
  0x2d   :  { %600 = vmatpush.msra.mxu1 %v2087_v48  ;;  %1584 = vmatmul.msk.f32.vlgmr.msrb.gmra.mxu2 %vm130_vm1, %v1582_v50 }
  0x2e   :  { %657 = vmatpush.msra.mxu2 %v1984_v2 }
  0x30   :  { %658 = vmatpush.msra.mxu2 %v1992_v4 }
  0x32   :  { %659 = vmatpush.msra.mxu2 %v1995_v5 }
  0x34   :  { %660 = vmatpush.msra.mxu2 %v2004_v7 }
  0x36   :  { %768 = vmatpush.msrb.mxu2 %v2070_v43 }
  0x38   :  { %769 = vmatpush.msrb.mxu2 %v2075_v45 }
  0x3a   :  { %770 = vmatpush.msrb.mxu2 %v2079_v46 }
  0x3c   :  { %771 = vmatpush.msrb.mxu2 %v2087_v48 }
  0x94   :  { %v127_v14 = vpop.f32.mrf.mxu0 }
  0x9b   :  { %v151_v16 = vpop.f32.mrf.mxu1 }
  0x9c   :  { %v152_v17 = vadd.f32 %v151_v16, %v127_v14 }
  0x9e   :  { %v157_v18 = vadd.f32 %v2052_v15, %v152_v17 }
  0xa0   :  { %1647 = vtanh.f32 %v157_v18  ;;  %v1578_v21 = vmul.f32 -1.442695, %v157_v18  ;;  %v228_v55 = vpop.f32.mrf.mxu2 }
  0xa2   :  { %1649 = vpow2.f32 %v1578_v21 }
  0xa6   :  { %v1648_v19 = vpop.eup %1647 }
  0xa7   :  { %184 = vrot.lane.b32.xlu0 %v1648_v19, %s1900_s3 }
  0xa8   :  { %v1650_v22 = vpop.eup %1649 }
  0xa9   :  { %v161_v23 = vadd.f32 1.0, %v1650_v22 }
  0xab   :  { %1651 = vrcp.f32 %v161_v23  ;;  %v173_v29 = vand.u32 2147483648, %v161_v23  ;;  %vm167_vm3 = vweird.f32 %v161_v23  ;;  %v171_v30 = vand.u32 2147483647, %v161_v23 }
  0xad   :  { %v174_v32 = vor.u32 1.1754944e-38, %v173_v29  ;;  %vm172_vm5 = vcmp.eq.f32.partialorder %v171_v30, 8.507059e+37 }
  0xaf   :  { %179 = vrot.lane.b32.xlu0 %v1574_v20, %s1901_s16 }
  0xb0   :  { %v343_v56 = vpop.f32.mrf.mxu2 }
  0xb1   :  { %v1652_v24 = vpop.eup %1651 }
  0xb2   :  { %v163_v25 = vmul.f32 %v1652_v24, %v161_v23  ;;  %vm168_vm2 = vweird.f32 %v1652_v24 }
  0xb3   :  { %vm169_vm4 = vmor %vm167_vm3, %vm168_vm2 }
  0xb4   :  { %v164_v26 = vsub.f32 1.0, %v163_v25 }
  0xb6   :  { %v165_v27 = vmul.f32 %v1652_v24, %v164_v26 }
  0xb8   :  { %v166_v28 = vadd.f32 %v1652_v24, %v165_v27 }
  0xba   :  { %v170_v31 = vsel %vm169_vm4, %v1652_v24, %v166_v28 }
  0xbb   :  { %v175_v34 = vsel %vm172_vm5, %v174_v32, %v170_v31 }
 0x119   :  { %v185_v33 = vpop.permute.xlu0 %184 }
 0x11a   :  { %v187_v35 = vmul.f32 %v185_v33, %v175_v34 }
 0x11c   :  { %189 = vrot.lane.b32.xlu1 %v187_v35, %s1901_s16 }
 0x121   :  { %v180_v36 = vpop.permute.xlu0 %179 }
 0x122   :  { %v182_v37 = vmul.f32 %v180_v36, %v175_v34 }
 0x18e   :  { %v190_v38 = vpop.permute.xlu1 %189 }
 0x18f   :  { %v2061_v39 = vadd.f32 %v190_v38, %v182_v37 }
 0x191   :  { %1653 = vtanh.f32 %v2061_v39 }
 0x197   :  { %v1654_v40 = vpop.eup %1653 }
 0x198   :  { %195 = vrot.lane.b32.xlu1 %v1654_v40, %s1900_s3 }
 0x1a0   :  { %281 = vrot.lane.b32.xlu1 %v1575_v53, %s1901_s16 }
 0x20a   :  { %v196_v51 = vpop.permute.xlu1 %195 }
 0x20b   :  { %v198_v52 = vmul.f32 %v196_v51, %v175_v34 }
 0x20d   :  { %232 = vrot.lane.b32.xlu2 %v198_v52, %s1901_s16 }
 0x267   :  { %v233_v54 = vpop.permute.xlu2 %232 }
 0x268   :  { %1580 = vmatmul.msk.f32.vlgmr.msra.gmra.mxu3 %vm106_vm0, %v233_v54  ;;  %1583 = vmatmul.msk.f32.vlgmr.msrb.gmra.mxu0 %vm106_vm0, %v233_v54  ;;  %v282_v54 = vpop.permute.xlu1 %281 }
 0x269   :  { %505 = vmatpush.msra.mxu3 %v1976_v0  ;;  %572 = vmatpush.msrb.mxu0 %v2065_v41 }
 0x26b   :  { %506 = vmatpush.msra.mxu3 %v1981_v1  ;;  %573 = vmatpush.msrb.mxu0 %v2067_v42 }
 0x26d   :  { %507 = vmatpush.msra.mxu3 %v1989_v3  ;;  %574 = vmatpush.msrb.mxu0 %v2072_v44 }
 0x26f   :  { %508 = vmatpush.msra.mxu3 %v2000_v6  ;;  %575 = vmatpush.msrb.mxu0 %v2082_v47 }
 0x271   :  { %509 = vmatpush.msra.mxu3 %v2009_v8 }
 0x273   :  { %510 = vmatpush.msra.mxu3 %v2019_v10 }
 0x275   :  { %511 = vmatpush.msra.mxu3 %v2027_v11 }
 0x277   :  { %512 = vmatpush.msra.mxu3 %v2034_v12 }
 0x2e5   :  { %v320_v57 = vpop.f32.mrf.mxu0 }
 0x2e6   :  { %v344_v58 = vadd.f32 %v343_v56, %v320_v57 }
 0x2e8   :  { %v346_v59 = vadd.f32 %v2052_v15, %v344_v58 }
 0x2ea   :  { %1655 = vtanh.f32 %v346_v59  ;;  %v1585_v18 = vmul.f32 -1.442695, %v346_v59 }
 0x2eb   :  { %v253_v61 = vpop.f32.mrf.mxu3 }
 0x2ec   :  { %v254_v62 = vadd.f32 %v253_v61, %v228_v55 }
 0x2ee   :  { %v259_v63 = vadd.f32 %v2148_v60, %v254_v62 }
 0x2f0   :  { %v1656_v9 = vpop.eup %1655  ;;  %1657 = vtanh.f32 %v259_v63  ;;  %v1581_v14 = vmul.f32 -1.442695, %v259_v63 }
 0x2f1   :  { %369 = vrot.lane.b32.xlu0 %v1656_v9, %s1900_s3 }
 0x2f2   :  { %1659 = vpow2.f32 %v1581_v14 }
 0x2f6   :  { %v1658_v13 = vpop.eup %1657 }
 0x2f7   :  { %286 = vrot.lane.b32.xlu2 %v1658_v13, %s1900_s3 }
 0x2f8   :  { %v1660_v16 = vpop.eup %1659 }
 0x2f9   :  { %v263_v17 = vadd.f32 1.0, %v1660_v16 }
 0x2fb   :  { %1661 = vrcp.f32 %v263_v17  ;;  %v275_v26 = vand.u32 2147483648, %v263_v17  ;;  %vm269_vm7 = vweird.f32 %v263_v17  ;;  %v273_v27 = vand.u32 2147483647, %v263_v17 }
 0x2fc   :  { %1663 = vpow2.f32 %v1585_v18 }
 0x2fd   :  { %v276_v30 = vor.u32 1.1754944e-38, %v275_v26  ;;  %vm274_vm9 = vcmp.eq.f32.partialorder %v273_v27, 8.507059e+37 }
 0x301   :  { %v1662_v19 = vpop.eup %1661 }
 0x302   :  { %v265_v20 = vmul.f32 %v1662_v19, %v263_v17  ;;  %v1664_v21 = vpop.eup %1663  ;;  %vm270_vm6 = vweird.f32 %v1662_v19 }
 0x303   :  { %v350_v23 = vadd.f32 1.0, %v1664_v21  ;;  %vm271_vm8 = vmor %vm269_vm7, %vm270_vm6 }
 0x304   :  { %v266_v22 = vsub.f32 1.0, %v265_v20 }
 0x305   :  { %1665 = vrcp.f32 %v350_v23  ;;  %v362_v38 = vand.u32 2147483648, %v350_v23  ;;  %vm356_vm11 = vweird.f32 %v350_v23  ;;  %v360_v40 = vand.u32 2147483647, %v350_v23 }
 0x306   :  { %v267_v24 = vmul.f32 %v1662_v19, %v266_v22 }
 0x307   :  { %v363_v50 = vor.u32 1.1754944e-38, %v362_v38  ;;  %vm361_vm13 = vcmp.eq.f32.partialorder %v360_v40, 8.507059e+37 }
 0x308   :  { %v268_v25 = vadd.f32 %v1662_v19, %v267_v24 }
 0x30a   :  { %v272_v29 = vsel %vm271_vm8, %v1662_v19, %v268_v25 }
 0x30b   :  { %v1666_v28 = vpop.eup %1665  ;;  %v277_v32 = vsel %vm274_vm9, %v276_v30, %v272_v29 }
 0x30c   :  { %v352_v31 = vmul.f32 %v1666_v28, %v350_v23  ;;  %vm357_vm10 = vweird.f32 %v1666_v28  ;;  %v284_v55 = vmul.f32 %v282_v54, %v277_v32 }
 0x30d   :  { %vm358_vm12 = vmor %vm356_vm11, %vm357_vm10 }
 0x30e   :  { %v353_v35 = vsub.f32 1.0, %v352_v31 }
 0x310   :  { %v354_v36 = vmul.f32 %v1666_v28, %v353_v35 }
 0x312   :  { %v355_v37 = vadd.f32 %v1666_v28, %v354_v36 }
 0x314   :  { %v359_v49 = vsel %vm358_vm12, %v1666_v28, %v355_v37 }
 0x315   :  { %v364_v52 = vsel %vm361_vm13, %v363_v50, %v359_v49 }
 0x316   :  { %v367_v59 = vmul.f32 %v364_v52, %v2061_v39  ;;  %v1589_v39 = vld [vmem:[%s2486_s0 + $0x4] sm:$0x3] }
 0x351   :  { %v287_v33 = vpop.permute.xlu2 %286 }
 0x352   :  { %v289_v34 = vmul.f32 %v287_v33, %v277_v32 }
 0x354   :  { %291 = vrot.lane.b32.xlu2 %v289_v34, %s1901_s16 }
 0x363   :  { %v370_v51 = vpop.permute.xlu0 %369 }
 0x364   :  { %v372_v53 = vmul.f32 %v370_v51, %v364_v52 }
 0x366   :  { %374 = vrot.lane.b32.xlu0 %v372_v53, %s1901_s16 }
 0x3ae   :  { %v292_v56 = vpop.permute.xlu2 %291 }
 0x3af   :  { %v2155_v57 = vadd.f32 %v292_v56, %v284_v55 }
 0x3b1   :  { %1667 = vtanh.f32 %v2155_v57 }
 0x3b7   :  { %v1668_v58 = vpop.eup %1667 }
 0x3b8   :  { %297 = vrot.lane.b32.xlu1 %v1668_v58, %s1900_s3 }
 0x3d8   :  { %v375_v61 = vpop.permute.xlu0 %374 }
 0x3d9   :  { %v2160_v62 = vadd.f32 %v375_v61, %v367_v59 }
 0x3db   :  { %1669 = vtanh.f32 %v2160_v62 }
 0x3e1   :  { %v1670_v63 = vpop.eup %1669 }
 0x3e2   :  { %380 = vrot.lane.b32.xlu2 %v1670_v63, %s1900_s3 }
 0x42a   :  { %v298_v9 = vpop.permute.xlu1 %297 }
 0x42b   :  { %v300_v13 = vmul.f32 %v298_v9, %v277_v32 }
 0x42d   :  { %385 = vrot.lane.b32.xlu0 %v300_v13, %s1901_s16 }
 0x43c   :  { %v381_v14 = vpop.permute.xlu2 %380 }
 0x43d   :  { %v383_v16 = vmul.f32 %v381_v14, %v364_v52 }
 0x43f   :  { %410 = vrot.lane.b32.xlu1 %v383_v16, %s1901_s16 }
 0x49f   :  { %v386_v17 = vpop.permute.xlu0 %385 }
 0x4a0   :  { %1586 = vmatmul.msk.f32.vlgmr.msrb.gmra.mxu3 %vm106_vm0, %v386_v17 }
 0x4a1   :  { %828 = vmatpush.msrb.mxu3 %v1984_v2 }
 0x4a3   :  { %829 = vmatpush.msrb.mxu3 %v1992_v4 }
 0x4a5   :  { %830 = vmatpush.msrb.mxu3 %v1995_v5 }
 0x4a7   :  { %831 = vmatpush.msrb.mxu3 %v2004_v7 }
 0x4a8   :  { %1591 = vmatmul.msk.f32.vlgmr.msra.gmra.mxu3 %vm130_vm1, %v1589_v39 }
 0x4a9   :  { %939 = vmatpush.msra.mxu3 %v2070_v43 }
 0x4ab   :  { %940 = vmatpush.msra.mxu3 %v2075_v45 }
 0x4ad   :  { %941 = vmatpush.msra.mxu3 %v2079_v46 }
 0x4af   :  { %942 = vmatpush.msra.mxu3 %v2087_v48 }
 0x4b1   :  { %v411_v18 = vpop.permute.xlu1 %410 }
 0x4b2   :  { %1587 = vmatmul.msk.f32.vlgmr.msra.gmra.mxu0 %vm106_vm0, %v411_v18  ;;  %1590 = vmatmul.msk.f32.vlgmr.msrb.gmra.mxu1 %vm106_vm0, %v411_v18 }
 0x4b3   :  { %676 = vmatpush.msra.mxu0 %v1976_v0  ;;  %743 = vmatpush.msrb.mxu1 %v2065_v41 }
 0x4b5   :  { %677 = vmatpush.msra.mxu0 %v1981_v1  ;;  %744 = vmatpush.msrb.mxu1 %v2067_v42 }
 0x4b7   :  { %678 = vmatpush.msra.mxu0 %v1989_v3  ;;  %745 = vmatpush.msrb.mxu1 %v2072_v44 }
 0x4b9   :  { %679 = vmatpush.msra.mxu0 %v2000_v6  ;;  %746 = vmatpush.msrb.mxu1 %v2082_v47 }
 0x4bb   :  { %680 = vmatpush.msra.mxu0 %v2009_v8 }
 0x4bd   :  { %681 = vmatpush.msra.mxu0 %v2019_v10 }
 0x4bf   :  { %682 = vmatpush.msra.mxu0 %v2027_v11 }
 0x4c1   :  { %683 = vmatpush.msra.mxu0 %v2034_v12 }
 0x523   :  { %v406_v19 = vpop.f32.mrf.mxu3 }
 0x52b   :  { %v514_v20 = vpop.f32.mrf.mxu3 }
 0x52f   :  { %v431_v21 = vpop.f32.mrf.mxu0  ;;  %v491_v22 = vpop.f32.mrf.mxu1 }
 0x530   :  { %v432_v23 = vadd.f32 %v431_v21, %v406_v19  ;;  %v515_v24 = vadd.f32 %v514_v20, %v491_v22 }
 0x532   :  { %v434_v25 = vadd.f32 %v2148_v60, %v432_v23  ;;  %v517_v26 = vadd.f32 %v2052_v15, %v515_v24 }
 0x534   :  { %1671 = vtanh.f32 %v434_v25  ;;  %v1588_v29 = vmul.f32 -1.442695, %v434_v25  ;;  %v1592_v33 = vmul.f32 -1.442695, %v517_v26 }
 0x535   :  { %1673 = vtanh.f32 %v517_v26 }
 0x536   :  { %1675 = vpow2.f32 %v1588_v29 }
 0x53a   :  { %v1672_v27 = vpop.eup %1671 }
 0x53b   :  { %v1674_v28 = vpop.eup %1673  ;;  %457 = vrot.lane.b32.xlu2 %v1672_v27, %s1900_s3 }
 0x53c   :  { %540 = vrot.lane.b32.xlu0 %v1674_v28, %s1900_s3  ;;  %v1676_v30 = vpop.eup %1675 }
 0x53d   :  { %v438_v31 = vadd.f32 1.0, %v1676_v30  ;;  %v1596_v30 = vld [vmem:[%s2486_s0 + $0x6] sm:$0x3] }
 0x53f   :  { %1677 = vrcp.f32 %v438_v31  ;;  %v450_v49 = vand.u32 2147483648, %v438_v31  ;;  %vm444_vm15 = vweird.f32 %v438_v31  ;;  %v448_v50 = vand.u32 2147483647, %v438_v31 }
 0x540   :  { %1679 = vpow2.f32 %v1592_v33 }
 0x541   :  { %v451_v52 = vor.u32 1.1754944e-38, %v450_v49  ;;  %vm449_vm3 = vcmp.eq.f32.partialorder %v448_v50, 8.507059e+37 }
 0x545   :  { %v1678_v32 = vpop.eup %1677 }
 0x546   :  { %v440_v34 = vmul.f32 %v1678_v32, %v438_v31  ;;  %v1680_v37 = vpop.eup %1679  ;;  %vm445_vm14 = vweird.f32 %v1678_v32 }
 0x547   :  { %v521_v38 = vadd.f32 1.0, %v1680_v37  ;;  %vm446_vm2 = vmor %vm444_vm15, %vm445_vm14 }
 0x548   :  { %v441_v35 = vsub.f32 1.0, %v440_v34 }
 0x549   :  { %1681 = vrcp.f32 %v521_v38  ;;  %v533_v9 = vand.u32 2147483648, %v521_v38  ;;  %vm527_vm5 = vweird.f32 %v521_v38  ;;  %v531_v13 = vand.u32 2147483647, %v521_v38 }
 0x54a   :  { %v442_v36 = vmul.f32 %v1678_v32, %v441_v35 }
 0x54b   :  { %v534_v16 = vor.u32 1.1754944e-38, %v533_v9  ;;  %vm532_vm7 = vcmp.eq.f32.partialorder %v531_v13, 8.507059e+37 }
 0x54c   :  { %v443_v40 = vadd.f32 %v1678_v32, %v442_v36 }
 0x54e   :  { %v447_v51 = vsel %vm446_vm2, %v1678_v32, %v443_v40 }
 0x54f   :  { %v452_v54 = vsel %vm449_vm3, %v451_v52, %v447_v51  ;;  %v1682_v56 = vpop.eup %1681 }
 0x550   :  { %v523_v58 = vmul.f32 %v1682_v56, %v521_v38  ;;  %vm528_vm4 = vweird.f32 %v1682_v56  ;;  %v455_v19 = vmul.f32 %v452_v54, %v2155_v57 }
 0x551   :  { %vm529_vm6 = vmor %vm527_vm5, %vm528_vm4 }
 0x552   :  { %v524_v59 = vsub.f32 1.0, %v523_v58 }
 0x554   :  { %v525_v61 = vmul.f32 %v1682_v56, %v524_v59 }
 0x556   :  { %v526_v63 = vadd.f32 %v1682_v56, %v525_v61 }
 0x558   :  { %v530_v14 = vsel %vm529_vm6, %v1682_v56, %v526_v63 }
 0x559   :  { %v535_v39 = vsel %vm532_vm7, %v534_v16, %v530_v14 }
 0x55a   :  { %v538_v20 = vmul.f32 %v535_v39, %v2160_v62 }
 0x595   :  { %v458_v53 = vpop.permute.xlu2 %457 }
 0x596   :  { %v460_v55 = vmul.f32 %v458_v53, %v452_v54 }
 0x598   :  { %462 = vrot.lane.b32.xlu1 %v460_v55, %s1901_s16 }
 0x5ae   :  { %v541_v17 = vpop.permute.xlu0 %540 }
 0x5af   :  { %v543_v18 = vmul.f32 %v541_v17, %v535_v39 }
 0x5b1   :  { %545 = vrot.lane.b32.xlu2 %v543_v18, %s1901_s16 }
 0x60a   :  { %v463_v21 = vpop.permute.xlu1 %462 }
 0x60b   :  { %v546_v22 = vpop.permute.xlu2 %545  ;;  %v2201_v23 = vadd.f32 %v463_v21, %v455_v19 }
 0x60c   :  { %v2203_v24 = vadd.f32 %v546_v22, %v538_v20 }
 0x60d   :  { %1683 = vtanh.f32 %v2201_v23 }
 0x60e   :  { %1685 = vtanh.f32 %v2203_v24 }
 0x613   :  { %v1684_v25 = vpop.eup %1683 }
 0x614   :  { %v1686_v26 = vpop.eup %1685  ;;  %468 = vrot.lane.b32.xlu0 %v1684_v25, %s1900_s3 }
 0x615   :  { %551 = vrot.lane.b32.xlu1 %v1686_v26, %s1900_s3 }
 0x686   :  { %v469_v27 = vpop.permute.xlu0 %468 }
 0x687   :  { %v552_v57 = vpop.permute.xlu1 %551  ;;  %v471_v28 = vmul.f32 %v469_v27, %v452_v54 }
 0x688   :  { %v554_v62 = vmul.f32 %v552_v57, %v535_v39 }
 0x689   :  { %556 = vrot.lane.b32.xlu2 %v471_v28, %s1901_s16 }
 0x68a   :  { %581 = vrot.lane.b32.xlu0 %v554_v62, %s1901_s16 }
 0x6e3   :  { %v557_v29 = vpop.permute.xlu2 %556 }
 0x6e4   :  { %1593 = vmatmul.msk.f32.vlgmr.msrb.gmra.mxu0 %vm106_vm0, %v557_v29 }
 0x6e5   :  { %999 = vmatpush.msrb.mxu0 %v1984_v2 }
 0x6e7   :  { %1000 = vmatpush.msrb.mxu0 %v1992_v4 }
 0x6e9   :  { %1001 = vmatpush.msrb.mxu0 %v1995_v5 }
 0x6eb   :  { %1002 = vmatpush.msrb.mxu0 %v2004_v7 }
 0x6ec   :  { %1598 = vmatmul.msk.f32.vlgmr.msra.gmra.mxu0 %vm130_vm1, %v1596_v30 }
 0x6ed   :  { %1110 = vmatpush.msra.mxu0 %v2070_v43 }
 0x6ef   :  { %1111 = vmatpush.msra.mxu0 %v2075_v45 }
 0x6f1   :  { %1112 = vmatpush.msra.mxu0 %v2079_v46 }
 0x6f3   :  { %1113 = vmatpush.msra.mxu0 %v2087_v48 }
 0x6fc   :  { %v582_v31 = vpop.permute.xlu0 %581 }
 0x6fd   :  { %1594 = vmatmul.msk.f32.vlgmr.msra.gmra.mxu1 %vm106_vm0, %v582_v31  ;;  %1597 = vmatmul.msk.f32.vlgmr.msra.gmra.mxu2 %vm106_vm0, %v582_v31 }
 0x6fe   :  { %847 = vmatpush.msra.mxu1 %v1976_v0  ;;  %914 = vmatpush.msra.mxu2 %v2065_v41 }
 0x700   :  { %848 = vmatpush.msra.mxu1 %v1981_v1  ;;  %915 = vmatpush.msra.mxu2 %v2067_v42 }
 0x702   :  { %849 = vmatpush.msra.mxu1 %v1989_v3  ;;  %916 = vmatpush.msra.mxu2 %v2072_v44 }
 0x704   :  { %850 = vmatpush.msra.mxu1 %v2000_v6  ;;  %917 = vmatpush.msra.mxu2 %v2082_v47 }
 0x706   :  { %851 = vmatpush.msra.mxu1 %v2009_v8 }
 0x708   :  { %852 = vmatpush.msra.mxu1 %v2019_v10 }
 0x70a   :  { %853 = vmatpush.msra.mxu1 %v2027_v11 }
 0x70c   :  { %854 = vmatpush.msra.mxu1 %v2034_v12 }
 0x761   :  { %v577_v32 = vpop.f32.mrf.mxu0 }
 0x769   :  { %v685_v36 = vpop.f32.mrf.mxu0 }
 0x77a   :  { %v602_v33 = vpop.f32.mrf.mxu1 }
 0x77b   :  { %v603_v34 = vadd.f32 %v602_v33, %v577_v32 }
 0x77d   :  { %v605_v35 = vadd.f32 %v2148_v60, %v603_v34 }
 0x77f   :  { %1687 = vtanh.f32 %v605_v35  ;;  %v1595_v54 = vmul.f32 -1.442695, %v605_v35 }
 0x780   :  { %v662_v37 = vpop.f32.mrf.mxu2 }
 0x781   :  { %v686_v38 = vadd.f32 %v685_v36, %v662_v37 }
 0x783   :  { %v688_v40 = vadd.f32 %v2052_v15, %v686_v38 }
 0x785   :  { %v1688_v49 = vpop.eup %1687  ;;  %1689 = vtanh.f32 %v688_v40  ;;  %v1599_v51 = vmul.f32 -1.442695, %v688_v40 }
 0x786   :  { %628 = vrot.lane.b32.xlu1 %v1688_v49, %s1900_s3 }
 0x787   :  { %1691 = vpow2.f32 %v1599_v51 }
 0x78b   :  { %v1690_v50 = vpop.eup %1689 }
 0x78c   :  { %711 = vrot.lane.b32.xlu2 %v1690_v50, %s1900_s3 }
 0x78d   :  { %v1692_v52 = vpop.eup %1691 }
 0x78e   :  { %v692_v53 = vadd.f32 1.0, %v1692_v52 }
 0x790   :  { %1693 = vrcp.f32 %v692_v53  ;;  %v704_v13 = vand.u32 2147483648, %v692_v53  ;;  %vm698_vm9 = vweird.f32 %v692_v53  ;;  %v702_v14 = vand.u32 2147483647, %v692_v53 }
 0x791   :  { %1695 = vpow2.f32 %v1595_v54 }
 0x792   :  { %v705_v39 = vor.u32 1.1754944e-38, %v704_v13  ;;  %vm703_vm11 = vcmp.eq.f32.partialorder %v702_v14, 8.507059e+37 }
 0x796   :  { %v1694_v55 = vpop.eup %1693 }
 0x797   :  { %v694_v56 = vmul.f32 %v1694_v55, %v692_v53  ;;  %v1696_v58 = vpop.eup %1695  ;;  %vm699_vm8 = vweird.f32 %v1694_v55 }
 0x798   :  { %v609_v61 = vadd.f32 1.0, %v1696_v58  ;;  %vm700_vm10 = vmor %vm698_vm9, %vm699_vm8 }
 0x799   :  { %v695_v59 = vsub.f32 1.0, %v694_v56 }
 0x79a   :  { %1697 = vrcp.f32 %v609_v61  ;;  %v621_v27 = vand.u32 2147483648, %v609_v61  ;;  %vm615_vm13 = vweird.f32 %v609_v61  ;;  %v619_v57 = vand.u32 2147483647, %v609_v61 }
 0x79b   :  { %v696_v63 = vmul.f32 %v1694_v55, %v695_v59 }
 0x79c   :  { %v622_v62 = vor.u32 1.1754944e-38, %v621_v27  ;;  %vm620_vm15 = vcmp.eq.f32.partialorder %v619_v57, 8.507059e+37 }
 0x79d   :  { %v697_v9 = vadd.f32 %v1694_v55, %v696_v63 }
 0x79f   :  { %v701_v17 = vsel %vm700_vm10, %v1694_v55, %v697_v9 }
 0x7a0   :  { %v1698_v16 = vpop.eup %1697  ;;  %v706_v20 = vsel %vm703_vm11, %v705_v39, %v701_v17 }
 0x7a1   :  { %v611_v18 = vmul.f32 %v1698_v16, %v609_v61  ;;  %vm616_vm12 = vweird.f32 %v1698_v16  ;;  %v709_v32 = vmul.f32 %v706_v20, %v2203_v24 }
 0x7a2   :  { %vm617_vm14 = vmor %vm615_vm13, %vm616_vm12 }
 0x7a3   :  { %v612_v22 = vsub.f32 1.0, %v611_v18 }
 0x7a5   :  { %v613_v25 = vmul.f32 %v1698_v16, %v612_v22 }
 0x7a7   :  { %v614_v26 = vadd.f32 %v1698_v16, %v613_v25 }
 0x7a9   :  { %v618_v28 = vsel %vm617_vm14, %v1698_v16, %v614_v26 }
 0x7aa   :  { %v623_v30 = vsel %vm620_vm15, %v622_v62, %v618_v28 }
 0x7ab   :  { %v626_v36 = vmul.f32 %v623_v30, %v2201_v23 }
 0x7e6   :  { %v712_v19 = vpop.permute.xlu2 %711 }
 0x7e7   :  { %v714_v21 = vmul.f32 %v712_v19, %v706_v20 }
 0x7e9   :  { %716 = vrot.lane.b32.xlu1 %v714_v21, %s1901_s16 }
 0x7f8   :  { %v629_v29 = vpop.permute.xlu1 %628 }
 0x7f9   :  { %v631_v31 = vmul.f32 %v629_v29, %v623_v30 }
 0x7fb   :  { %633 = vrot.lane.b32.xlu0 %v631_v31, %s1901_s16 }
 0x85b   :  { %v717_v33 = vpop.permute.xlu1 %716 }
 0x85c   :  { %v2245_v34 = vadd.f32 %v717_v33, %v709_v32 }
 0x85e   :  { %1699 = vtanh.f32 %v2245_v34 }
 0x864   :  { %v1700_v35 = vpop.eup %1699 }
 0x865   :  { %722 = vrot.lane.b32.xlu0 %v1700_v35, %s1900_s3 }
 0x86d   :  { %v634_v37 = vpop.permute.xlu0 %633 }
 0x86e   :  { %v2250_v38 = vadd.f32 %v634_v37, %v626_v36 }
 0x870   :  { %1701 = vtanh.f32 %v2250_v38 }
 0x876   :  { %v1702_v40 = vpop.eup %1701 }
 0x877   :  { %639 = vrot.lane.b32.xlu2 %v1702_v40, %s1900_s3 }
 0x8d1   :  { %v640_v49 = vpop.permute.xlu2 %639 }
 0x8d2   :  { %v642_v24 = vmul.f32 %v640_v49, %v623_v30 }
 0x8d4   :  { %727 = vrot.lane.b32.xlu1 %v642_v24, %s1901_s16 }
 0x8d7   :  { %v723_v50 = vpop.permute.xlu0 %722 }
 0x8d8   :  { %v725_v51 = vmul.f32 %v723_v50, %v706_v20 }
 0x8da   :  { %752 = vrot.lane.b32.xlu2 %v725_v51, %s1901_s16 }
 0x934   :  { %v753_v52 = vpop.permute.xlu2 %752 }
 0x935   :  { %1601 = vmatmul.msk.f32.vlgmr.msrb.gmra.mxu2 %vm106_vm0, %v753_v52  ;;  %1604 = vmatmul.msk.f32.vlgmr.msrb.gmra.mxu3 %vm106_vm0, %v753_v52 }
 0x936   :  { %1018 = vmatpush.msrb.mxu2 %v1976_v0  ;;  %1085 = vmatpush.msrb.mxu3 %v2065_v41 }
 0x938   :  { %1019 = vmatpush.msrb.mxu2 %v1981_v1  ;;  %1086 = vmatpush.msrb.mxu3 %v2067_v42  ;;  %v1603_v1 = vld [vmem:[%s2486_s0 + $0x8] sm:$0x3] }
 0x93a   :  { %1020 = vmatpush.msrb.mxu2 %v1989_v3  ;;  %1087 = vmatpush.msrb.mxu3 %v2072_v44 }
 0x93c   :  { %1021 = vmatpush.msrb.mxu2 %v2000_v6  ;;  %1088 = vmatpush.msrb.mxu3 %v2082_v47 }
 0x93e   :  { %1022 = vmatpush.msrb.mxu2 %v2009_v8 }
 0x940   :  { %1023 = vmatpush.msrb.mxu2 %v2019_v10 }
 0x942   :  { %1024 = vmatpush.msrb.mxu2 %v2027_v11 }
 0x944   :  { %1025 = vmatpush.msrb.mxu2 %v2034_v12 }
 0x946   :  { %v728_v0 = vpop.permute.xlu1 %727 }
 0x947   :  { %1600 = vmatmul.msk.f32.vlgmr.msrb.gmra.mxu1 %vm106_vm0, %v728_v0 }
 0x948   :  { %1170 = vmatpush.msrb.mxu1 %v1984_v2 }
 0x94a   :  { %1171 = vmatpush.msrb.mxu1 %v1992_v4 }
 0x94c   :  { %1172 = vmatpush.msrb.mxu1 %v1995_v5 }
 0x94e   :  { %1173 = vmatpush.msrb.mxu1 %v2004_v7 }
 0x94f   :  { %1605 = vmatmul.msk.f32.vlgmr.msra.gmra.mxu1 %vm130_vm1, %v1603_v1  ;;  %v1776_v1 = vld [vmem:[#allocation2 + $0x10] sm:$0xff] }
 0x950   :  { %1281 = vmatpush.msra.mxu1 %v2070_v43 }
 0x952   :  { %1282 = vmatpush.msra.mxu1 %v2075_v45 }
 0x954   :  { %1283 = vmatpush.msra.mxu1 %v2079_v46 }
 0x956   :  { %1284 = vmatpush.msra.mxu1 %v2087_v48 }
 0x9b8   :  { %v773_v2 = vpop.f32.mrf.mxu2  ;;  %v833_v8 = vpop.f32.mrf.mxu3 }
 0x9c4   :  { %v748_v3 = vpop.f32.mrf.mxu1 }
 0x9c5   :  { %v774_v4 = vadd.f32 %v773_v2, %v748_v3  ;;  %v1777_v2 = vld [vmem:[#allocation2 + $0x8] sm:$0xff] }
 0x9c6   :  { %v1610_v3 = vld [vmem:[%s2486_s0 + $0xa] sm:$0x3] }
 0x9c7   :  { %v776_v6 = vadd.f32 %v2148_v60, %v774_v4 }
 0x9c9   :  { %1703 = vtanh.f32 %v776_v6  ;;  %v1602_v23 = vmul.f32 -1.442695, %v776_v6  ;;  %v1778_v6 = vld [vmem:[#allocation2] sm:$0xff] }
 0x9cc   :  { %v856_v5 = vpop.f32.mrf.mxu1 }
 0x9cd   :  { %v857_v10 = vadd.f32 %v856_v5, %v833_v8  ;;  %v2311_v8 = vld [vmem:[%s2488_s2 + $0x38] sm:$0xff]  ;;  %v2319_v5 = vld [vmem:[%s2488_s2 + $0x30] sm:$0xff] }
 0x9cf   :  { %v1704_v7 = vpop.eup %1703  ;;  %v859_v11 = vadd.f32 %v2052_v15, %v857_v10  ;;  %v2327_v10 = vld [vmem:[%s2488_s2 + $0x28] sm:$0xff] }
 0x9d0   :  { %799 = vrot.lane.b32.xlu0 %v1704_v7, %s1900_s3 }
 0x9d1   :  { %1705 = vtanh.f32 %v859_v11  ;;  %v1606_v53 = vmul.f32 -1.442695, %v859_v11 }
 0x9d2   :  { %1707 = vpow2.f32 %v1602_v23 }
 0x9d3   :  { %1709 = vpow2.f32 %v1606_v53  ;;  %v2368_v53 = vld [vmem:[%s2490_s4] ss:$0 sm:$0xff]  ;;  %s1558_s4 = sshll.u32 %s2496_s10, 4  ;;  %s1559_s4 = int_to_ptr.hbm [resolvable:$true] %s1558_s4 }
 0x9d7   :  { %v1706_v12 = vpop.eup %1705 }
 0x9d8   :  { %882 = vrot.lane.b32.xlu1 %v1706_v12, %s1900_s3  ;;  %v1708_v54 = vpop.eup %1707 }
 0x9d9   :  { %v780_v55 = vadd.f32 1.0, %v1708_v54  ;;  %v1710_v56 = vpop.eup %1709 }
 0x9da   :  { %v863_v58 = vadd.f32 1.0, %v1710_v56 }
 0x9db   :  { %1711 = vrcp.f32 %v780_v55  ;;  %v792_v17 = vand.u32 2147483648, %v780_v55  ;;  %vm786_vm3 = vweird.f32 %v780_v55  ;;  %v790_v39 = vand.u32 2147483647, %v780_v55 }
 0x9dc   :  { %1713 = vrcp.f32 %v863_v58  ;;  %v875_v27 = vand.u32 2147483648, %v863_v58  ;;  %vm869_vm7 = vweird.f32 %v863_v58  ;;  %v873_v57 = vand.u32 2147483647, %v863_v58 }
 0x9dd   :  { %v793_v20 = vor.u32 1.1754944e-38, %v792_v17  ;;  %vm791_vm5 = vcmp.eq.f32.partialorder %v790_v39, 8.507059e+37 }
 0x9de   :  { %v876_v62 = vor.u32 1.1754944e-38, %v875_v27  ;;  %vm874_vm9 = vcmp.eq.f32.partialorder %v873_v57, 8.507059e+37 }
 0x9e1   :  { %v1712_v59 = vpop.eup %1711 }
 0x9e2   :  { %v782_v61 = vmul.f32 %v1712_v59, %v780_v55  ;;  %v1714_v15 = vpop.eup %1713  ;;  %vm787_vm2 = vweird.f32 %v1712_v59 }
 0x9e3   :  { %v865_v13 = vmul.f32 %v1714_v15, %v863_v58  ;;  %vm788_vm4 = vmor %vm786_vm3, %vm787_vm2  ;;  %vm870_vm6 = vweird.f32 %v1714_v15 }
 0x9e4   :  { %v783_v63 = vsub.f32 1.0, %v782_v61  ;;  %vm871_vm8 = vmor %vm869_vm7, %vm870_vm6 }
 0x9e5   :  { %v866_v16 = vsub.f32 1.0, %v865_v13 }
 0x9e6   :  { %v784_v9 = vmul.f32 %v1712_v59, %v783_v63 }
 0x9e7   :  { %v867_v19 = vmul.f32 %v1714_v15, %v866_v16 }
 0x9e8   :  { %v785_v14 = vadd.f32 %v1712_v59, %v784_v9 }
 0x9e9   :  { %v868_v26 = vadd.f32 %v1714_v15, %v867_v19 }
 0x9ea   :  { %v789_v18 = vsel %vm788_vm4, %v1712_v59, %v785_v14 }
 0x9eb   :  { %v794_v22 = vsel %vm791_vm5, %v793_v20, %v789_v18  ;;  %v872_v28 = vsel %vm871_vm8, %v1714_v15, %v868_v26 }
 0x9ec   :  { %v877_v30 = vsel %vm874_vm9, %v876_v62, %v872_v28  ;;  %v797_v32 = vmul.f32 %v794_v22, %v2250_v38 }
 0x9ed   :  { %v880_v37 = vmul.f32 %v877_v30, %v2245_v34  ;;  %v1775_v34 = vld [vmem:[#allocation2 + $0x18] sm:$0xff] }
 0xa42   :  { %v800_v21 = vpop.permute.xlu0 %799 }
 0xa43   :  { %v802_v25 = vmul.f32 %v800_v21, %v794_v22 }
 0xa45   :  { %804 = vrot.lane.b32.xlu2 %v802_v25, %s1901_s16 }
 0xa4a   :  { %v883_v29 = vpop.permute.xlu1 %882 }
 0xa4b   :  { %v885_v31 = vmul.f32 %v883_v29, %v877_v30 }
 0xa4d   :  { %887 = vrot.lane.b32.xlu0 %v885_v31, %s1901_s16 }
 0xa9f   :  { %v805_v33 = vpop.permute.xlu2 %804 }
 0xaa0   :  { %v2290_v35 = vadd.f32 %v805_v33, %v797_v32 }
 0xaa2   :  { %1715 = vtanh.f32 %v2290_v35 }
 0xaa8   :  { %v1716_v36 = vpop.eup %1715 }
 0xaa9   :  { %810 = vrot.lane.b32.xlu1 %v1716_v36, %s1900_s3 }
 0xabf   :  { %v888_v40 = vpop.permute.xlu0 %887 }
 0xac0   :  { %v2295_v49 = vadd.f32 %v888_v40, %v880_v37 }
 0xac2   :  { %1717 = vtanh.f32 %v2295_v49 }
 0xac8   :  { %v1718_v24 = vpop.eup %1717 }
 0xac9   :  { %893 = vrot.lane.b32.xlu2 %v1718_v24, %s1900_s3 }
 0xb1b   :  { %v811_v50 = vpop.permute.xlu1 %810 }
 0xb1c   :  { %v813_v38 = vmul.f32 %v811_v50, %v794_v22 }
 0xb1e   :  { %898 = vrot.lane.b32.xlu0 %v813_v38, %s1901_s16 }
 0xb23   :  { %v894_v51 = vpop.permute.xlu2 %893 }
 0xb24   :  { %v896_v52 = vmul.f32 %v894_v51, %v877_v30 }
 0xb26   :  { %923 = vrot.lane.b32.xlu1 %v896_v52, %s1901_s16 }
 0xb90   :  { %v899_v0 = vpop.permute.xlu0 %898 }
 0xb91   :  { %1607 = vmatmul.msk.f32.vlgmr.msra.gmra.mxu2 %vm106_vm0, %v899_v0 }
 0xb92   :  { %1341 = vmatpush.msra.mxu2 %v1775_v34 }
 0xb94   :  { %1342 = vmatpush.msra.mxu2 %v1776_v1 }
 0xb96   :  { %1343 = vmatpush.msra.mxu2 %v1777_v2 }
 0xb98   :  { %v924_v4 = vpop.permute.xlu1 %923  ;;  %1344 = vmatpush.msra.mxu2 %v1778_v6  ;;  %v1617_v6 = vld [vmem:[%s2486_s0 + $0xc] sm:$0x3] }
 0xb99   :  { %1608 = vmatmul.msk.f32.vlgmr.msra.gmra.mxu3 %vm106_vm0, %v924_v4  ;;  %1611 = vmatmul.msk.f32.vlgmr.msrb.gmra.mxu0 %vm106_vm0, %v924_v4 }
 0xb9a   :  { %1612 = vmatmul.msk.f32.vlgmr.msrb.gmra.mxu2 %vm130_vm1, %v1610_v3  ;;  %1189 = vmatpush.msra.mxu3 %v2311_v8 }
 0xb9b   :  { %1256 = vmatpush.msrb.mxu0 %v2065_v41  ;;  %1452 = vmatpush.msrb.mxu2 %v2070_v43  ;;  %v2335_v41 = vld [vmem:[%s2488_s2 + $0x20] sm:$0xff]  ;;  %v2349_v43 = vld [vmem:[%s2488_s2 + $0x10] sm:$0xff] }
 0xb9c   :  { %1190 = vmatpush.msra.mxu3 %v2319_v5 }
 0xb9d   :  { %1257 = vmatpush.msrb.mxu0 %v2067_v42  ;;  %1453 = vmatpush.msrb.mxu2 %v2075_v45  ;;  %v2343_v42 = vld [vmem:[%s2488_s2 + $0x18] sm:$0xff]  ;;  %v2361_v45 = vld [vmem:[%s2488_s2] sm:$0xff] }
 0xb9e   :  { %1191 = vmatpush.msra.mxu3 %v2327_v10 }
 0xb9f   :  { %1258 = vmatpush.msrb.mxu0 %v2072_v44  ;;  %1454 = vmatpush.msrb.mxu2 %v2079_v46  ;;  %v2355_v44 = vld [vmem:[%s2488_s2 + $0x8] sm:$0xff] }
 0xba0   :  { %1192 = vmatpush.msra.mxu3 %v2335_v41 }
 0xba1   :  { %1259 = vmatpush.msrb.mxu0 %v2082_v47  ;;  %1455 = vmatpush.msrb.mxu2 %v2087_v48 }
 0xba2   :  { %1193 = vmatpush.msra.mxu3 %v2343_v42 }
 0xba4   :  { %1194 = vmatpush.msra.mxu3 %v2349_v43 }
 0xba6   :  { %1195 = vmatpush.msra.mxu3 %v2355_v44 }
 0xba8   :  { %1196 = vmatpush.msra.mxu3 %v2361_v45 }
 0xc14   :  { %v919_v46 = vpop.f32.mrf.mxu2 }
 0xc16   :  { %v1004_v48 = vpop.f32.mrf.mxu0 }
 0xc1c   :  { %v944_v47 = vpop.f32.mrf.mxu3 }
 0xc1d   :  { %v945_v7 = vadd.f32 %v944_v47, %v919_v46  ;;  %v1027_v11 = vpop.f32.mrf.mxu2  ;;  %v1788_v47 = vld [vmem:[#allocation7 + $0x18] sm:$0xff] }
 0xc1e   :  { %v1028_v12 = vadd.f32 %v1027_v11, %v1004_v48  ;;  %v1789_v48 = vld [vmem:[#allocation7 + $0x10] sm:$0xff]  ;;  %v1791_v11 = vld [vmem:[#allocation7] sm:$0xff] }
 0xc1f   :  { %v947_v23 = vadd.f32 %v2148_v60, %v945_v7  ;;  %v1790_v7 = vld [vmem:[#allocation7 + $0x8] sm:$0xff] }
 0xc20   :  { %v1030_v54 = vadd.f32 %v2368_v53, %v1028_v12 }
 0xc21   :  { %1719 = vtanh.f32 %v947_v23  ;;  %v1609_v58 = vmul.f32 -1.442695, %v947_v23 }
 0xc22   :  { %1721 = vtanh.f32 %v1030_v54  ;;  %v1613_v15 = vmul.f32 -1.442695, %v1030_v54 }
 0xc23   :  { %1723 = vpow2.f32 %v1609_v58 }
 0xc27   :  { %v1720_v55 = vpop.eup %1719 }
 0xc28   :  { %v1722_v56 = vpop.eup %1721  ;;  %970 = vrot.lane.b32.xlu2 %v1720_v55, %s1900_s3 }
 0xc29   :  { %1053 = vrot.lane.b32.xlu0 %v1722_v56, %s1900_s3  ;;  %v1724_v59 = vpop.eup %1723 }
 0xc2a   :  { %v951_v61 = vadd.f32 1.0, %v1724_v59 }
 0xc2c   :  { %1725 = vrcp.f32 %v951_v61  ;;  %v963_v18 = vand.u32 2147483648, %v951_v61  ;;  %vm957_vm11 = vweird.f32 %v951_v61  ;;  %v961_v19 = vand.u32 2147483647, %v951_v61 }
 0xc2d   :  { %1727 = vpow2.f32 %v1613_v15 }
 0xc2e   :  { %v964_v21 = vor.u32 1.1754944e-38, %v963_v18  ;;  %vm962_vm13 = vcmp.eq.f32.partialorder %v961_v19, 8.507059e+37 }
 0xc32   :  { %v1726_v63 = vpop.eup %1725 }
 0xc33   :  { %v953_v9 = vmul.f32 %v1726_v63, %v951_v61  ;;  %v1728_v16 = vpop.eup %1727  ;;  %vm958_vm10 = vweird.f32 %v1726_v63 }
 0xc34   :  { %v1034_v17 = vadd.f32 1.0, %v1728_v16  ;;  %vm959_vm12 = vmor %vm957_vm11, %vm958_vm10 }
 0xc35   :  { %v954_v13 = vsub.f32 1.0, %v953_v9 }
 0xc36   :  { %1729 = vrcp.f32 %v1034_v17  ;;  %v1046_v30 = vand.u32 2147483648, %v1034_v17  ;;  %vm1040_vm15 = vweird.f32 %v1034_v17  ;;  %v1044_v31 = vand.u32 2147483647, %v1034_v17 }
 0xc37   :  { %v955_v14 = vmul.f32 %v1726_v63, %v954_v13 }
 0xc38   :  { %v1047_v33 = vor.u32 1.1754944e-38, %v1046_v30  ;;  %vm1045_vm3 = vcmp.eq.f32.partialorder %v1044_v31, 8.507059e+37 }
 0xc39   :  { %v956_v39 = vadd.f32 %v1726_v63, %v955_v14 }
 0xc3b   :  { %v960_v20 = vsel %vm959_vm12, %v1726_v63, %v956_v39 }
 0xc3c   :  { %v965_v25 = vsel %vm962_vm13, %v964_v21, %v960_v20  ;;  %v1730_v27 = vpop.eup %1729 }
 0xc3d   :  { %v1036_v57 = vmul.f32 %v1730_v27, %v1034_v17  ;;  %vm1041_vm14 = vweird.f32 %v1730_v27  ;;  %v968_v24 = vmul.f32 %v965_v25, %v2290_v35 }
 0xc3e   :  { %vm1042_vm2 = vmor %vm1040_vm15, %vm1041_vm14 }
 0xc3f   :  { %v1037_v28 = vsub.f32 1.0, %v1036_v57 }
 0xc41   :  { %v1038_v62 = vmul.f32 %v1730_v27, %v1037_v28 }
 0xc43   :  { %v1039_v29 = vadd.f32 %v1730_v27, %v1038_v62 }
 0xc45   :  { %v1043_v32 = vsel %vm1042_vm2, %v1730_v27, %v1039_v29 }
 0xc46   :  { %v1048_v37 = vsel %vm1045_vm3, %v1047_v33, %v1043_v32 }
 0xc47   :  { %v1051_v50 = vmul.f32 %v1048_v37, %v2295_v49 }
 0xc82   :  { %v971_v22 = vpop.permute.xlu2 %970 }
 0xc83   :  { %v973_v26 = vmul.f32 %v971_v22, %v965_v25 }
 0xc85   :  { %975 = vrot.lane.b32.xlu1 %v973_v26, %s1901_s16 }
 0xc9b   :  { %v1054_v36 = vpop.permute.xlu0 %1053 }
 0xc9c   :  { %v1056_v40 = vmul.f32 %v1054_v36, %v1048_v37 }
 0xc9e   :  { %1058 = vrot.lane.b32.xlu2 %v1056_v40, %s1901_s16 }
 0xcf7   :  { %v976_v38 = vpop.permute.xlu1 %975 }
 0xcf8   :  { %v1059_v51 = vpop.permute.xlu2 %1058  ;;  %v2377_v52 = vadd.f32 %v976_v38, %v968_v24 }
 0xcf9   :  { %v2379_v0 = vadd.f32 %v1059_v51, %v1051_v50 }
 0xcfa   :  { %1731 = vtanh.f32 %v2377_v52 }
 0xcfb   :  { %1733 = vtanh.f32 %v2379_v0 }
 0xd00   :  { %v1732_v34 = vpop.eup %1731 }
 0xd01   :  { %v1734_v1 = vpop.eup %1733  ;;  %981 = vrot.lane.b32.xlu0 %v1732_v34, %s1900_s3 }
 0xd02   :  { %1064 = vrot.lane.b32.xlu1 %v1734_v1, %s1900_s3 }
 0xd73   :  { %v982_v2 = vpop.permute.xlu0 %981 }
 0xd74   :  { %v1065_v35 = vpop.permute.xlu1 %1064  ;;  %v984_v3 = vmul.f32 %v982_v2, %v965_v25 }
 0xd75   :  { %v1067_v49 = vmul.f32 %v1065_v35, %v1048_v37 }
 0xd76   :  { %1069 = vrot.lane.b32.xlu2 %v984_v3, %s1901_s16  ;;  %v1624_v3 = vld [vmem:[%s2486_s0 + $0xe] sm:$0x3] }
 0xd77   :  { %1094 = vrot.lane.b32.xlu0 %v1067_v49, %s1901_s16 }
 0xdd0   :  { %v1070_v4 = vpop.permute.xlu2 %1069 }
 0xdd1   :  { %1614 = vmatmul.msk.f32.vlgmr.msrb.gmra.mxu3 %vm106_vm0, %v1070_v4 }
 0xdd9   :  { %1619 = vmatmul.msk.f32.vlgmr.msra.gmra.mxu3 %vm130_vm1, %v1617_v6 }
 0xde9   :  { %v1095_v46 = vpop.permute.xlu0 %1094 }
 0xdea   :  { %1615 = vmatmul.msk.f32.vlgmr.msra.gmra.mxu0 %vm106_vm0, %v1095_v46  ;;  %1618 = vmatmul.msk.f32.vlgmr.msrb.gmra.mxu1 %vm106_vm0, %v1095_v46  ;;  %v2430_v46 = vld [vmem:[%s2493_s7] ss:$0 sm:$0xff] }
 0xdeb   :  { %1360 = vmatpush.msra.mxu0 %v2311_v8  ;;  %1427 = vmatpush.msrb.mxu1 %v1788_v47 }
 0xded   :  { %1361 = vmatpush.msra.mxu0 %v2319_v5  ;;  %1428 = vmatpush.msrb.mxu1 %v1789_v48 }
 0xdef   :  { %1362 = vmatpush.msra.mxu0 %v2327_v10  ;;  %1429 = vmatpush.msrb.mxu1 %v1790_v7 }
 0xdf1   :  { %1363 = vmatpush.msra.mxu0 %v2335_v41  ;;  %1430 = vmatpush.msrb.mxu1 %v1791_v11 }
 0xdf3   :  { %1364 = vmatpush.msra.mxu0 %v2343_v42 }
 0xdf5   :  { %1365 = vmatpush.msra.mxu0 %v2349_v43 }
 0xdf7   :  { %1366 = vmatpush.msra.mxu0 %v2355_v44 }
 0xdf9   :  { %1367 = vmatpush.msra.mxu0 %v2361_v45 }
 0xe54   :  { %v1090_v8 = vpop.f32.mrf.mxu3 }
 0xe5c   :  { %v1198_v5 = vpop.f32.mrf.mxu3 }
 0xe67   :  { %v1115_v12 = vpop.f32.mrf.mxu0  ;;  %v1175_v23 = vpop.f32.mrf.mxu1 }
 0xe68   :  { %v1116_v54 = vadd.f32 %v1115_v12, %v1090_v8  ;;  %v1199_v10 = vadd.f32 %v1198_v5, %v1175_v23 }
 0xe6a   :  { %v1118_v55 = vadd.f32 %v2148_v60, %v1116_v54  ;;  %v1201_v41 = vadd.f32 %v2368_v53, %v1199_v10 }
 0xe6c   :  { %1735 = vtanh.f32 %v1118_v55  ;;  %v1620_v43 = vmul.f32 -1.442695, %v1201_v41  ;;  %v1616_v59 = vmul.f32 -1.442695, %v1118_v55 }
 0xe6d   :  { %1737 = vtanh.f32 %v1201_v41 }
 0xe6e   :  { %1739 = vpow2.f32 %v1620_v43 }
 0xe72   :  { %v1736_v56 = vpop.eup %1735 }
 0xe73   :  { %v1738_v42 = vpop.eup %1737  ;;  %1141 = vrot.lane.b32.xlu1 %v1736_v56, %s1900_s3 }
 0xe74   :  { %1224 = vrot.lane.b32.xlu2 %v1738_v42, %s1900_s3  ;;  %v1740_v44 = vpop.eup %1739 }
 0xe75   :  { %v1205_v45 = vadd.f32 1.0, %v1740_v44 }
 0xe77   :  { %1741 = vrcp.f32 %v1205_v45  ;;  %v1217_v14 = vand.u32 2147483648, %v1205_v45  ;;  %vm1211_vm5 = vweird.f32 %v1205_v45  ;;  %v1215_v16 = vand.u32 2147483647, %v1205_v45 }
 0xe78   :  { %1743 = vpow2.f32 %v1616_v59 }
 0xe79   :  { %v1218_v39 = vor.u32 1.1754944e-38, %v1217_v14  ;;  %vm1216_vm7 = vcmp.eq.f32.partialorder %v1215_v16, 8.507059e+37 }
 0xe7d   :  { %v1742_v58 = vpop.eup %1741 }
 0xe7e   :  { %v1207_v61 = vmul.f32 %v1742_v58, %v1205_v45  ;;  %v1744_v63 = vpop.eup %1743  ;;  %vm1212_vm4 = vweird.f32 %v1742_v58 }
 0xe7f   :  { %v1122_v9 = vadd.f32 1.0, %v1744_v63  ;;  %vm1213_vm6 = vmor %vm1211_vm5, %vm1212_vm4  ;;  %vm1534_vm5 = vcmask 254976  }
 0xe80   :  { %v1208_v60 = vsub.f32 1.0, %v1207_v61 }
 0xe81   :  { %1745 = vrcp.f32 %v1122_v9  ;;  %v1134_v57 = vand.u32 2147483648, %v1122_v9  ;;  %vm1128_vm9 = vweird.f32 %v1122_v9  ;;  %v1132_v28 = vand.u32 2147483647, %v1122_v9 }
 0xe82   :  { %v1209_v15 = vmul.f32 %v1742_v58, %v1208_v60 }
 0xe83   :  { %v1135_v29 = vor.u32 1.1754944e-38, %v1134_v57  ;;  %vm1133_vm11 = vcmp.eq.f32.partialorder %v1132_v28, 8.507059e+37 }
 0xe84   :  { %v1210_v13 = vadd.f32 %v1742_v58, %v1209_v15 }
 0xe86   :  { %v1214_v17 = vsel %vm1213_vm6, %v1742_v58, %v1210_v13 }
 0xe87   :  { %v1219_v19 = vsel %vm1216_vm7, %v1218_v39, %v1214_v17  ;;  %v1746_v20 = vpop.eup %1745 }
 0xe88   :  { %v1124_v22 = vmul.f32 %v1746_v20, %v1122_v9  ;;  %vm1129_vm8 = vweird.f32 %v1746_v20  ;;  %v1222_v33 = vmul.f32 %v1219_v19, %v2379_v0 }
 0xe89   :  { %vm1130_vm10 = vmor %vm1128_vm9, %vm1129_vm8 }
 0xe8a   :  { %v1125_v25 = vsub.f32 1.0, %v1124_v22 }
 0xe8c   :  { %v1126_v26 = vmul.f32 %v1746_v20, %v1125_v25 }
 0xe8e   :  { %v1127_v27 = vadd.f32 %v1746_v20, %v1126_v26 }
 0xe90   :  { %v1131_v62 = vsel %vm1130_vm10, %v1746_v20, %v1127_v27  ;;  %vm1531_vm10 = vcmask 58368  }
 0xe91   :  { %v1136_v31 = vsel %vm1133_vm11, %v1135_v29, %v1131_v62 }
 0xe92   :  { %v1139_v24 = vmul.f32 %v1136_v31, %v2377_v52 }
 0xece   :  { %v1225_v18 = vpop.permute.xlu2 %1224 }
 0xecf   :  { %v1227_v21 = vmul.f32 %v1225_v18, %v1219_v19 }
 0xed1   :  { %1229 = vrot.lane.b32.xlu1 %v1227_v21, %s1901_s16 }
 0xee5   :  { %v1142_v30 = vpop.permute.xlu1 %1141 }
 0xee6   :  { %v1144_v32 = vmul.f32 %v1142_v30, %v1136_v31 }
 0xee8   :  { %1146 = vrot.lane.b32.xlu0 %v1144_v32, %s1901_s16 }
 0xf43   :  { %v1230_v36 = vpop.permute.xlu1 %1229 }
 0xf44   :  { %v2409_v37 = vadd.f32 %v1230_v36, %v1222_v33 }
 0xf46   :  { %1747 = vtanh.f32 %v2409_v37 }
 0xf4c   :  { %v1748_v40 = vpop.eup %1747 }
 0xf4d   :  { %1235 = vrot.lane.b32.xlu0 %v1748_v40, %s1900_s3 }
 0xf5a   :  { %v1147_v50 = vpop.permute.xlu0 %1146 }
 0xf5b   :  { %v2414_v38 = vadd.f32 %v1147_v50, %v1139_v24 }
 0xf5d   :  { %1749 = vtanh.f32 %v2414_v38 }
 0xf63   :  { %v1750_v51 = vpop.eup %1749 }
 0xf64   :  { %1152 = vrot.lane.b32.xlu2 %v1750_v51, %s1900_s3 }
 0xfbe   :  { %v1153_v34 = vpop.permute.xlu2 %1152 }
 0xfbf   :  { %v1236_v0 = vpop.permute.xlu0 %1235  ;;  %v1155_v1 = vmul.f32 %v1153_v34, %v1136_v31 }
 0xfc0   :  { %v1238_v2 = vmul.f32 %v1236_v0, %v1219_v19 }
 0xfc1   :  { %1240 = vrot.lane.b32.xlu1 %v1155_v1, %s1901_s16 }
 0xfc2   :  { %1265 = vrot.lane.b32.xlu2 %v1238_v2, %s1901_s16 }
0x101c   :  { %v1266_v35 = vpop.permute.xlu2 %1265 }
0x101d   :  { %1622 = vmatmul.msk.f32.vlgmr.msra.gmra.mxu1 %vm106_vm0, %v1266_v35  ;;  %1625 = vmatmul.msk.f32.vlgmr.msra.gmra.mxu2 %vm106_vm0, %v1266_v35 }
0x1033   :  { %v1241_v52 = vpop.permute.xlu1 %1240 }
0x1034   :  { %1621 = vmatmul.msk.f32.vlgmr.msrb.gmra.mxu0 %vm106_vm0, %v1241_v52 }
0x103c   :  { %1626 = vmatmul.msk.f32.vlgmr.msra.gmra.mxu0 %vm130_vm1, %v1624_v3 }
0x109a   :  { %v1286_v49 = vpop.f32.mrf.mxu1 }
0x10a0   :  { %v1346_v48 = vpop.f32.mrf.mxu2 }
0x10b1   :  { %v1261_v4 = vpop.f32.mrf.mxu0 }
0x10b2   :  { %v1287_v6 = vadd.f32 %v1286_v49, %v1261_v4 }
0x10b4   :  { %v1289_v47 = vadd.f32 %v2430_v46, %v1287_v6 }
0x10b6   :  { %1751 = vtanh.f32 %v1289_v47  ;;  %v1623_v23 = vmul.f32 -1.442695, %v1289_v47 }
0x10b9   :  { %v1369_v7 = vpop.f32.mrf.mxu0 }
0x10ba   :  { %v1370_v11 = vadd.f32 %v1369_v7, %v1346_v48 }
0x10bc   :  { %v1752_v8 = vpop.eup %1751  ;;  %v1372_v5 = vadd.f32 %v2368_v53, %v1370_v11 }
0x10bd   :  { %1312 = vrot.lane.b32.xlu1 %v1752_v8, %s1900_s3 }
0x10be   :  { %1753 = vtanh.f32 %v1372_v5  ;;  %v1627_v54 = vmul.f32 -1.442695, %v1372_v5 }
0x10bf   :  { %1755 = vpow2.f32 %v1623_v23 }
0x10c0   :  { %1757 = vpow2.f32 %v1627_v54 }
0x10c4   :  { %v1754_v12 = vpop.eup %1753 }
0x10c5   :  { %1395 = vrot.lane.b32.xlu0 %v1754_v12, %s1900_s3  ;;  %v1756_v10 = vpop.eup %1755 }
0x10c6   :  { %v1293_v55 = vadd.f32 1.0, %v1756_v10  ;;  %v1758_v41 = vpop.eup %1757 }
0x10c7   :  { %v1376_v56 = vadd.f32 1.0, %v1758_v41 }
0x10c8   :  { %1759 = vrcp.f32 %v1293_v55  ;;  %v1305_v60 = vand.u32 2147483648, %v1293_v55  ;;  %vm1299_vm12 = vweird.f32 %v1293_v55  ;;  %v1303_v63 = vand.u32 2147483647, %v1293_v55 }
0x10c9   :  { %1761 = vrcp.f32 %v1376_v56  ;;  %v1388_v18 = vand.u32 2147483648, %v1376_v56  ;;  %vm1382_vm2 = vweird.f32 %v1376_v56  ;;  %v1386_v19 = vand.u32 2147483647, %v1376_v56 }
0x10ca   :  { %v1306_v13 = vor.u32 1.1754944e-38, %v1305_v60  ;;  %vm1304_vm14 = vcmp.eq.f32.partialorder %v1303_v63, 8.507059e+37 }
0x10cb   :  { %v1389_v21 = vor.u32 1.1754944e-38, %v1388_v18  ;;  %vm1387_vm4 = vcmp.eq.f32.partialorder %v1386_v19, 8.507059e+37 }
0x10ce   :  { %v1760_v42 = vpop.eup %1759 }
0x10cf   :  { %v1295_v43 = vmul.f32 %v1760_v42, %v1293_v55  ;;  %v1762_v53 = vpop.eup %1761  ;;  %vm1300_vm1 = vweird.f32 %v1760_v42 }
0x10d0   :  { %v1378_v58 = vmul.f32 %v1762_v53, %v1376_v56  ;;  %vm1301_vm13 = vmor %vm1299_vm12, %vm1300_vm1  ;;  %vm1383_vm15 = vweird.f32 %v1762_v53  ;;  %v1501_v56 = vld [vmem:[%s2494_s8 + $0x18] sm:$0xff] }
0x10d1   :  { %v1296_v44 = vsub.f32 1.0, %v1295_v43  ;;  %vm1384_vm3 = vmor %vm1382_vm2, %vm1383_vm15  ;;  %1523 = vmatpush.msrb.mxu3 %v1501_v56  ;;  %v1499_v43 = vld [vmem:[%s2494_s8 + $0x8] sm:$0xff] }
0x10d2   :  { %v1379_v61 = vsub.f32 1.0, %v1378_v58 }
0x10d3   :  { %v1297_v45 = vmul.f32 %v1760_v42, %v1296_v44  ;;  %v1498_v44 = vld [vmem:[%s2494_s8] sm:$0xff] }
0x10d4   :  { %v1380_v9 = vmul.f32 %v1762_v53, %v1379_v61  ;;  %v1646_v61 = vld [vmem:[%s2495_s9] ss:$0 sm:$0xff] }
0x10d5   :  { %v1298_v59 = vadd.f32 %v1760_v42, %v1297_v45 }
0x10d6   :  { %v1381_v39 = vadd.f32 %v1762_v53, %v1380_v9 }
0x10d7   :  { %v1302_v15 = vsel %vm1301_vm13, %v1760_v42, %v1298_v59  ;;  %v1500_v42 = vld [vmem:[%s2494_s8 + $0x10] sm:$0xff] }
0x10d8   :  { %v1307_v16 = vsel %vm1304_vm14, %v1306_v13, %v1302_v15  ;;  %v1385_v20 = vsel %vm1384_vm3, %v1762_v53, %v1381_v39  ;;  %1524 = vmatpush.msrb.mxu3 %v1500_v42 }
0x10d9   :  { %v1390_v25 = vsel %vm1387_vm4, %v1389_v21, %v1385_v20  ;;  %v1310_v29 = vmul.f32 %v1307_v16, %v2414_v38 }
0x10da   :  { %v1393_v27 = vmul.f32 %v1390_v25, %v2409_v37  ;;  %1525 = vmatpush.msrb.mxu3 %v1499_v43 }
0x10dc   :  { %1526 = vmatpush.msrb.mxu3 %v1498_v44 }
0x112f   :  { %v1313_v14 = vpop.permute.xlu1 %1312 }
0x1130   :  { %v1315_v17 = vmul.f32 %v1313_v14, %v1307_v16 }
0x1132   :  { %1317 = vrot.lane.b32.xlu0 %v1315_v17, %s1901_s16 }
0x1137   :  { %v1396_v22 = vpop.permute.xlu0 %1395 }
0x1138   :  { %v1398_v26 = vmul.f32 %v1396_v22, %v1390_v25 }
0x113a   :  { %1400 = vrot.lane.b32.xlu2 %v1398_v26, %s1901_s16 }
0x1194   :  { %v1401_v57 = vpop.permute.xlu2 %1400 }
0x1195   :  { %v1403_v28 = vadd.f32 %v1401_v57, %v1393_v27 }
0x1197   :  { %1763 = vtanh.f32 %v1403_v28 }
0x119d   :  { %v1764_v62 = vpop.eup %1763 }
0x119e   :  { %1406 = vrot.lane.b32.xlu1 %v1764_v62, %s1900_s3 }
0x11a4   :  { %v1318_v30 = vpop.permute.xlu0 %1317 }
0x11a5   :  { %v1320_v31 = vadd.f32 %v1318_v30, %v1310_v29 }
0x11a7   :  { %1765 = vtanh.f32 %v1320_v31 }
0x11ad   :  { %v1766_v32 = vpop.eup %1765 }
0x11ae   :  { %1323 = vrot.lane.b32.xlu2 %v1766_v32, %s1900_s3 }
0x1208   :  { %v1324_v33 = vpop.permute.xlu2 %1323 }
0x1209   :  { %v1326_v36 = vmul.f32 %v1324_v33, %v1307_v16 }
0x120b   :  { %1411 = vrot.lane.b32.xlu1 %v1326_v36, %s1901_s16 }
0x1210   :  { %v1407_v40 = vpop.permute.xlu1 %1406 }
0x1211   :  { %v1409_v37 = vmul.f32 %v1407_v40, %v1390_v25 }
0x1213   :  { %1436 = vrot.lane.b32.xlu0 %v1409_v37, %s1901_s16 }
0x127d   :  { %v1412_v24 = vpop.permute.xlu1 %1411 }
0x127e   :  { %1628 = vmatmul.msk.f32.vlgmr.msrb.gmra.mxu1 %vm106_vm0, %v1412_v24 }
0x1285   :  { %v1437_v50 = vpop.permute.xlu0 %1436 }
0x1286   :  { %1535 = vst.msk [vmem:[%s2497_s11] sm:$0x3] %vm1534_vm5, %v1437_v50  ;;  %1629 = vmatmul.msk.f32.vlgmr.msrb.gmra.mxu2 %vm106_vm0, %v1437_v50 }
0x12fb   :  { %v1432_v38 = vpop.f32.mrf.mxu1 }
0x1309   :  { %v1457_v51 = vpop.f32.mrf.mxu2 }
0x130a   :  { %v1458_v34 = vadd.f32 %v1457_v51, %v1432_v38 }
0x130c   :  { %v1460_v0 = vadd.f32 %v2430_v46, %v1458_v34 }
0x130e   :  { %1767 = vtanh.f32 %v1460_v0  ;;  %v1630_v2 = vmul.f32 -1.442695, %v1460_v0 }
0x1310   :  { %1769 = vpow2.f32 %v1630_v2 }
0x1314   :  { %v1768_v1 = vpop.eup %1767 }
0x1315   :  { %1483 = vrot.lane.b32.xlu2 %v1768_v1, %s1900_s3 }
0x1316   :  { %v1770_v35 = vpop.eup %1769 }
0x1317   :  { %v1464_v52 = vadd.f32 1.0, %v1770_v35 }
0x1319   :  { %1771 = vrcp.f32 %v1464_v52  ;;  %v1476_v48 = vand.u32 2147483648, %v1464_v52  ;;  %vm1470_vm7 = vweird.f32 %v1464_v52  ;;  %v1474_v7 = vand.u32 2147483647, %v1464_v52 }
0x131b   :  { %v1477_v11 = vor.u32 1.1754944e-38, %v1476_v48  ;;  %vm1475_vm9 = vcmp.eq.f32.partialorder %v1474_v7, 8.507059e+37 }
0x131f   :  { %v1772_v3 = vpop.eup %1771 }
0x1320   :  { %v1466_v49 = vmul.f32 %v1772_v3, %v1464_v52  ;;  %vm1471_vm6 = vweird.f32 %v1772_v3 }
0x1321   :  { %vm1472_vm8 = vmor %vm1470_vm7, %vm1471_vm6 }
0x1322   :  { %v1467_v4 = vsub.f32 1.0, %v1466_v49 }
0x1324   :  { %v1468_v6 = vmul.f32 %v1772_v3, %v1467_v4 }
0x1326   :  { %v1469_v47 = vadd.f32 %v1772_v3, %v1468_v6 }
0x1328   :  { %v1473_v46 = vsel %vm1472_vm8, %v1772_v3, %v1469_v47 }
0x1329   :  { %v1478_v5 = vsel %vm1475_vm9, %v1477_v11, %v1473_v46 }
0x132a   :  { %v1481_v23 = vmul.f32 %v1478_v5, %v1320_v31 }
0x136f   :  { %v1484_v8 = vpop.permute.xlu2 %1483 }
0x1370   :  { %v1486_v12 = vmul.f32 %v1484_v8, %v1478_v5 }
0x1372   :  { %1488 = vrot.lane.b32.xlu0 %v1486_v12, %s1901_s16 }
0x137a   :  { %1537 = vrot.lane.b32.xlu0 %v1403_v28, %s1902_s5 }
0x13e4   :  { %v1489_v54 = vpop.permute.xlu0 %1488 }
0x13e5   :  { %v1491_v10 = vadd.f32 %v1489_v54, %v1481_v23 }
0x13e7   :  { %1773 = vtanh.f32 %v1491_v10 }
0x13ec   :  { %v1538_v55 = vpop.permute.xlu0 %1537 }
0x13ed   :  { %v1774_v41 = vpop.eup %1773  ;;  %1632 = vst.msk [vmem:[%s2497_s11 + $0x4] sm:$0x3] %vm1534_vm5, %v1538_v55 }
0x13ee   :  { %1494 = vrot.lane.b32.xlu1 %v1774_v41, %s1900_s3 }
0x13f6   :  { %1546 = vrot.lane.b32.xlu1 %v1491_v10, %s1902_s5 }
0x1460   :  { %v1495_v53 = vpop.permute.xlu1 %1494 }
0x1461   :  { %v1497_v45 = vmul.f32 %v1495_v53, %v1478_v5 }
0x1463   :  { %1507 = vrot.lane.b32.xlu2 %v1497_v45, %s1901_s16  ;;  %s1556_s16 = sshll.u32 %s1903_s26, 4  ;;  %s1557_s16 = int_to_ptr.vmem [resolvable:$true] %s1556_s16 }
0x1468   :  { %v1547_v58 = vpop.permute.xlu1 %1546 }
0x1469   :  { %1634 = vst.msk [vmem:[%s2497_s11 + $0x6] sm:$0x3] %vm1534_vm5, %v1547_v58 }
0x14bd   :  { %v1508_v59 = vpop.permute.xlu2 %1507 }
0x14be   :  { %1633 = vst.msk [vmem:[%s2497_s11 + $0x2] sm:$0x3] %vm1534_vm5, %v1508_v59  ;;  %1631 = vmatmul.msk.f32.vlgmr.msrb.gmra.mxu3 %vm106_vm0, %v1508_v59 }
0x1541   :  { %v1528_v60 = vpop.f32.mrf.mxu3 }
0x1542   :  { %v1529_v63 = vadd.f32 %v1646_v61, %v1528_v60 }
0x1544   :  { %1532 = vst.msk [vmem:[#allocation8] sm:$0x3] %vm1531_vm10, %v1529_v63 }
0x1545   :  { %1561 = dma.vmem_to_hbm [thread:$0]  %s1557_s16, 32, %s1559_s4, [#allocation4]  }
0x1546   :  { %1893 = dma.done.wait [#allocation4], 32  }
0x1547   :  { %1894 = vsyncadd [#allocation4], 4294967264 }
0x1548   :  { %1570 = vsyncpa [#allocation3], 1 }
0x1549   :  { %1571 = vsyncpa [#allocation6], 1 }
0x154a   :  { %1572 = vsyncpa [#allocation4], 1 }

</bundles_post_ra>
